<compile_context>
chip_gen: v6e
topology: v6e:2x2x1
jax: 0.10.0
libtpu: 0.0.40
codegen_flags: <defaults>
</compile_context>

<pallas_src>
import numpy as np
import jax
import jax.numpy as jnp
from jax import lax
from jax.experimental import pallas as pl
from jax.experimental.pallas import tpu as pltpu

# ---- synthetic "config" ----
NUM_VIDEOS = 4
LATENT_DIMENSION = 8
NUM_LAYERS = 3           # 2 hidden Linear+ReLU, then Linear(NUM_CHANNELS, 3)+Sigmoid
NUM_CHANNELS = 32
MAPPING_SIZE = 16        # Fourier feature mapping size (B has MAPPING_SIZE rows)
COORD_DIM = 3            # (t, y, x) coordinates
USE_LATENTS = True

CHUNK = 512              # in-kernel column sub-tile (bounds live vregs)
MIN_TILE = 512           # one chunk
MAX_TILE = 8192          # per-grid-step pixels; VMEM footprint stays in the low MBs
TARGET_MIN_TILES = 8     # keep >= ~8 grid steps so v7x's 2 TensorCores stay balanced


def _choose_tile(n_pixels):
    """Largest CHUNK-multiple tile in [MIN_TILE, MAX_TILE] that keeps >= TARGET_MIN_TILES steps."""
    t = -(-n_pixels // TARGET_MIN_TILES)          # cdiv
    t = -(-t // CHUNK) * CHUNK                    # round up to CHUNK
    return int(max(MIN_TILE, min(MAX_TILE, t)))


def videomlp_kernel(xT_ref, b_ref,
                    w1_ref, b1_ref,
                    w2_ref, b2_ref,
                    w3_ref, b3_ref,
                    out_ref):
    # xT_ref: (COORD_DIM, TILE) coords (2*pi already folded into B).
    # out_ref: (3, TILE) lane-dense output.
    n_chunks = out_ref.shape[1] // CHUNK          # static (TILE is a multiple of CHUNK)

    def body(c, carry):
        col = pl.multiple_of(c * CHUNK, CHUNK)
        x = xT_ref[:, pl.ds(col, CHUNK)]                                  # (3, CHUNK)

        # Fourier projection: (2*pi*B) @ x  ->  (M, CHUNK)
        xp = jnp.dot(b_ref[...], x, preferred_element_type=jnp.float32)

        # concat(sin, cos) along the sublane (feature) axis -> (2*M, CHUNK)
        feat = jnp.concatenate([jnp.sin(xp), jnp.cos(xp)], axis=0)

        # layer 1 (latent-code term folded into b1_eff): (C, 2M) @ (2M, CHUNK)
        h = jnp.dot(w1_ref[...], feat, preferred_element_type=jnp.float32) + b1_ref[...]
        h = jnp.maximum(h, 0.0)

        # layer 2: (C, C) @ (C, CHUNK)
        h = jnp.dot(w2_ref[...], h, preferred_element_type=jnp.float32) + b2_ref[...]
        h = jnp.maximum(h, 0.0)

        # output layer: (3, C) @ (C, CHUNK); sigmoid via tanh (single EUP op)
        o = jnp.dot(w3_ref[...], h, preferred_element_type=jnp.float32) + b3_ref[...]
        out_ref[:, pl.ds(col, CHUNK)] = 0.5 * (jnp.tanh(0.5 * o) + 1.0)
        return carry

    lax.fori_loop(0, n_chunks, body, 0, unroll=True)


def precompute_coords(x_coords, tile):
    """Transpose + pad the coordinate grid once (it is static across training steps)."""
    F, H, Wd, Cd = x_coords.shape
    N = F * H * Wd
    n_tiles = pl.cdiv(N, tile)
    N_pad = n_tiles * tile
    xT = x_coords.reshape(N, Cd).astype(jnp.float32).T                    # (Cd, N)
    if N_pad != N:
        xT = jnp.pad(xT, ((0, 0), (0, N_pad - N)))
    return xT, N


def videomlp_forward_lane_dense(xT_pad, n_valid, B, latents, data_idx, params, tile):
    """Runs the kernel on pre-transposed coords; returns lane-dense (3, n_valid)."""
    W1, b1, W2, b2, W3, b3 = params
    Cd, N_pad = xT_pad.shape
    M = MAPPING_SIZE
    n_tiles = N_pad // tile

    # Fold 2*pi into the (tiny, grid-invariant) Fourier matrix.
    B_scaled = (2.0 * np.pi) * B                                          # (M, Cd)

    # Fold the grid-invariant latent-code contribution into the layer-1 bias:
    #   concat(feat, code) @ W1.T + b1 == feat @ W1_sc.T + (b1 + code @ W1_lat.T)
    W1_sc = W1[:, :2 * M]                                                 # (C, 2M)
    b1_eff = b1 + W1[:, 2 * M:] @ latents[data_idx]                       # (C,)
    b1_ = b1_eff[:, None]                                                 # (C, 1) lane-broadcast
    b2_ = b2[:, None]                                                     # (C, 1)
    b3_ = b3[:, None]                                                     # (3, 1)

    full = lambda i: (0, 0)
    out = pl.pallas_call(
        videomlp_kernel,
        out_shape=jax.ShapeDtypeStruct((3, N_pad), jnp.float32),
        grid_spec=pltpu.PrefetchScalarGridSpec(
            num_scalar_prefetch=0,
            grid=(n_tiles,),
            in_specs=[
                pl.BlockSpec((Cd, tile), lambda i: (0, i)),               # coords tile
                pl.BlockSpec(B_scaled.shape, full),                       # 2*pi*B  (M, Cd)
                pl.BlockSpec(W1_sc.shape, full),                          # (C, 2M)
                pl.BlockSpec(b1_.shape, full),                            # (C, 1)
                pl.BlockSpec(W2.shape, full),                             # (C, C)
                pl.BlockSpec(b2_.shape, full),                            # (C, 1)
                pl.BlockSpec(W3.shape, full),                             # (3, C)
                pl.BlockSpec(b3_.shape, full),                            # (3, 1)
            ],
            out_specs=pl.BlockSpec((3, tile), lambda i: (0, i)),
        ),
        compiler_params=pltpu.CompilerParams(
            dimension_semantics=("parallel",)),
    )(xT_pad, B_scaled, W1_sc, b1_, W2, b2_, W3, b3_)

    return out[:, :n_valid]


def videomlp_forward(x_coords, B, latents, data_idx, params):
    """Convenience wrapper: (F, H, W, COORD_DIM) -> (F, H, W, 3).

    For production training loops, call precompute_coords() once and use
    videomlp_forward_lane_dense() directly (reshape the target to (3, N)
    instead of transposing the prediction every step).
    """
    F, H, Wd, _ = x_coords.shape
    N = F * H * Wd
    tile = _choose_tile(N)
    xT_pad, _ = precompute_coords(x_coords, tile)
    out = videomlp_forward_lane_dense(xT_pad, N, B, latents, data_idx, params, tile)
    return out.T.reshape(F, H, Wd, 3)


def videomlp_ref(x_coords, B, latents, data_idx, params):
    """Pure-JAX reference mirroring the PyTorch forward exactly."""
    W1, b1, W2, b2, W3, b3 = params
    F, H, Wd, _ = x_coords.shape
    x_proj = jnp.matmul(2.0 * np.pi * x_coords, B.T)
    feat = jnp.concatenate([jnp.sin(x_proj), jnp.cos(x_proj)], axis=-1)
    code = jnp.broadcast_to(latents[data_idx], (F, H, Wd, LATENT_DIMENSION))
    inp = jnp.concatenate([feat, code], axis=-1)
    h = jax.nn.relu(inp @ W1.T + b1)
    h = jax.nn.relu(h @ W2.T + b2)
    return jax.nn.sigmoid(h @ W3.T + b3)


def make_params(key):
    k = jax.random.split(key, 8)
    in_dim = 2 * MAPPING_SIZE + LATENT_DIMENSION
    B = jax.random.normal(k[0], (MAPPING_SIZE, COORD_DIM), jnp.float32) * 10.0
    latents = jax.random.uniform(k[1], (NUM_VIDEOS, LATENT_DIMENSION), jnp.float32)

    def linear(kw, kb, fan_in, fan_out):
        bound = 1.0 / np.sqrt(fan_in)
        W = jax.random.uniform(kw, (fan_out, fan_in), jnp.float32, -bound, bound)
        b = jax.random.uniform(kb, (fan_out,), jnp.float32, -bound, bound)
        return W, b

    W1, b1 = linear(k[2], k[3], in_dim, NUM_CHANNELS)
    W2, b2 = linear(k[4], k[5], NUM_CHANNELS, NUM_CHANNELS)
    W3, b3 = linear(k[6], k[7], NUM_CHANNELS, 3)
    return B, latents, (W1, b1, W2, b2, W3, b3)


if __name__ == "__main__":
    key = jax.random.PRNGKey(0)
    B, latents, params = make_params(key)

    # small video coordinate grid: F frames of H x W pixels, coords in [0, 1]
    # N = 2*30*30 = 1800 -> tile = 512 -> 4 grid steps (exercises padded tail tile)
    F, H, W = 2, 30, 30
    t = jnp.linspace(0.0, 1.0, F)
    y = jnp.linspace(0.0, 1.0, H)
    x = jnp.linspace(0.0, 1.0, W)
    tt, yy, xx = jnp.meshgrid(t, y, x, indexing="ij")
    coords = jnp.stack([tt, yy, xx], axis=-1).astype(jnp.float32)   # (F, H, W, 3)

    data_idx = 1

    out = videomlp_forward(coords, B, latents, data_idx, params)
    out = jax.block_until_ready(out)

    ref = videomlp_ref(coords, B, latents, data_idx, params)
    assert out.shape == (F, H, W, 3)
    np.testing.assert_allclose(np.asarray(out), np.asarray(ref), rtol=1e-5, atol=3e-5)

    print("KERNEL_OK")
</pallas_src>

<mosaic_0001>
module attributes {stable_mosaic.version = 11 : i64} {
  func.func @videomlp_kernel(%arg0: i32, %arg1: memref<3x512xf32, #tpu.memory_space<vmem>>, %arg2: memref<16x3xf32, #tpu.memory_space<vmem>>, %arg3: memref<32x32xf32, #tpu.memory_space<vmem>>, %arg4: memref<32x1xf32, #tpu.memory_space<vmem>>, %arg5: memref<32x32xf32, #tpu.memory_space<vmem>>, %arg6: memref<32x1xf32, #tpu.memory_space<vmem>>, %arg7: memref<3x32xf32, #tpu.memory_space<vmem>>, %arg8: memref<3x1xf32, #tpu.memory_space<vmem>>, %arg9: memref<3x512xf32, #tpu.memory_space<vmem>>) attributes {dimension_semantics = [#tpu.dimension_semantics<parallel>], iteration_bounds = array<i64: 4>, scalar_prefetch = 0 : i64, scratch_operands = 0 : i64, tpu.core_type = #tpu.core_type<tc>, window_params = [{transform_indices = @transform_0, window_bounds = array<i64: 3, 512>}, {pipeline_mode = #tpu.pipeline_mode<synchronous>, transform_indices = @transform_1, window_bounds = array<i64: 16, 3>}, {pipeline_mode = #tpu.pipeline_mode<synchronous>, transform_indices = @transform_2, window_bounds = array<i64: 32, 32>}, {pipeline_mode = #tpu.pipeline_mode<synchronous>, transform_indices = @transform_3, window_bounds = array<i64: 32, 1>}, {pipeline_mode = #tpu.pipeline_mode<synchronous>, transform_indices = @transform_4, window_bounds = array<i64: 32, 32>}, {pipeline_mode = #tpu.pipeline_mode<synchronous>, transform_indices = @transform_5, window_bounds = array<i64: 32, 1>}, {pipeline_mode = #tpu.pipeline_mode<synchronous>, transform_indices = @transform_6, window_bounds = array<i64: 3, 32>}, {pipeline_mode = #tpu.pipeline_mode<synchronous>, transform_indices = @transform_7, window_bounds = array<i64: 3, 1>}, {transform_indices = @transform_8, window_bounds = array<i64: 3, 512>}]} {
    %c0_i32 = arith.constant 0 : i32
    %c512_i32 = arith.constant 512 : i32
    %0 = arith.muli %c0_i32, %c512_i32 : i32
    %1 = tpu.assume_multiple %0, 512 : i32
    %c0 = arith.constant 0 : index
    %2 = arith.index_cast %1 : i32 to index
    %3 = vector.load %arg1[%c0, %2] : memref<3x512xf32, #tpu.memory_space<vmem>>, vector<3x512xf32>
    %c0_0 = arith.constant 0 : index
    %c0_1 = arith.constant 0 : index
    %4 = vector.load %arg2[%c0_0, %c0_1] : memref<16x3xf32, #tpu.memory_space<vmem>>, vector<16x3xf32>
    %cst = arith.constant dense<0.000000e+00> : vector<16x512xf32>
    %5 = tpu.matmul %4, %3, %cst {dimension_numbers = #tpu.dot_dimension_numbers<[1], [0], [0], [1], [0, 0, 1, 1], [], []>} : vector<16x3xf32>, vector<3x512xf32>, vector<16x512xf32> -> vector<16x512xf32>
    %6 = math.sin %5 : vector<16x512xf32>
    %7 = math.cos %5 : vector<16x512xf32>
    %8 = tpu.concatenate %6, %7 in 0 : vector<16x512xf32>, vector<16x512xf32> -> vector<32x512xf32>
    %c0_2 = arith.constant 0 : index
    %c0_3 = arith.constant 0 : index
    %9 = vector.load %arg3[%c0_2, %c0_3] : memref<32x32xf32, #tpu.memory_space<vmem>>, vector<32x32xf32>
    %cst_4 = arith.constant dense<0.000000e+00> : vector<32x512xf32>
    %10 = tpu.matmul %9, %8, %cst_4 {dimension_numbers = #tpu.dot_dimension_numbers<[1], [0], [0], [1], [0, 0, 1, 1], [], []>} : vector<32x32xf32>, vector<32x512xf32>, vector<32x512xf32> -> vector<32x512xf32>
    %c0_5 = arith.constant 0 : index
    %c0_6 = arith.constant 0 : index
    %11 = vector.load %arg4[%c0_5, %c0_6] : memref<32x1xf32, #tpu.memory_space<vmem>>, vector<32x1xf32>
    %12 = vector.broadcast %11 : vector<32x1xf32> to vector<32x512xf32>
    %13 = arith.addf %10, %12 : vector<32x512xf32>
    %cst_7 = arith.constant 0.000000e+00 : f32
    %14 = vector.broadcast %cst_7 : f32 to vector<32x512xf32>
    %15 = arith.maximumf %13, %14 : vector<32x512xf32>
    %c0_8 = arith.constant 0 : index
    %c0_9 = arith.constant 0 : index
    %16 = vector.load %arg5[%c0_8, %c0_9] : memref<32x32xf32, #tpu.memory_space<vmem>>, vector<32x32xf32>
    %cst_10 = arith.constant dense<0.000000e+00> : vector<32x512xf32>
    %17 = tpu.matmul %16, %15, %cst_10 {dimension_numbers = #tpu.dot_dimension_numbers<[1], [0], [0], [1], [0, 0, 1, 1], [], []>} : vector<32x32xf32>, vector<32x512xf32>, vector<32x512xf32> -> vector<32x512xf32>
    %c0_11 = arith.constant 0 : index
    %c0_12 = arith.constant 0 : index
    %18 = vector.load %arg6[%c0_11, %c0_12] : memref<32x1xf32, #tpu.memory_space<vmem>>, vector<32x1xf32>
    %19 = vector.broadcast %18 : vector<32x1xf32> to vector<32x512xf32>
    %20 = arith.addf %17, %19 : vector<32x512xf32>
    %cst_13 = arith.constant 0.000000e+00 : f32
    %21 = vector.broadcast %cst_13 : f32 to vector<32x512xf32>
    %22 = arith.maximumf %20, %21 : vector<32x512xf32>
    %c0_14 = arith.constant 0 : index
    %c0_15 = arith.constant 0 : index
    %23 = vector.load %arg7[%c0_14, %c0_15] : memref<3x32xf32, #tpu.memory_space<vmem>>, vector<3x32xf32>
    %cst_16 = arith.constant dense<0.000000e+00> : vector<3x512xf32>
    %24 = tpu.matmul %23, %22, %cst_16 {dimension_numbers = #tpu.dot_dimension_numbers<[1], [0], [0], [1], [0, 0, 1, 1], [], []>} : vector<3x32xf32>, vector<32x512xf32>, vector<3x512xf32> -> vector<3x512xf32>
    %c0_17 = arith.constant 0 : index
    %c0_18 = arith.constant 0 : index
    %25 = vector.load %arg8[%c0_17, %c0_18] : memref<3x1xf32, #tpu.memory_space<vmem>>, vector<3x1xf32>
    %26 = vector.broadcast %25 : vector<3x1xf32> to vector<3x512xf32>
    %27 = arith.addf %24, %26 : vector<3x512xf32>
    %cst_19 = arith.constant 5.000000e-01 : f32
    %28 = vector.broadcast %cst_19 : f32 to vector<3x512xf32>
    %29 = arith.mulf %28, %27 : vector<3x512xf32>
    %30 = math.tanh %29 : vector<3x512xf32>
    %cst_20 = arith.constant 1.000000e+00 : f32
    %31 = vector.broadcast %cst_20 : f32 to vector<3x512xf32>
    %32 = arith.addf %30, %31 : vector<3x512xf32>
    %cst_21 = arith.constant 5.000000e-01 : f32
    %33 = vector.broadcast %cst_21 : f32 to vector<3x512xf32>
    %34 = arith.mulf %33, %32 : vector<3x512xf32>
    %c0_22 = arith.constant 0 : index
    %35 = arith.index_cast %1 : i32 to index
    %36 = vector.load %arg9[%c0_22, %35] : memref<3x512xf32, #tpu.memory_space<vmem>>, vector<3x512xf32>
    tpu.vector_store %arg9[%c0_22, %35], %34 {strides = array<i32>} : memref<3x512xf32, #tpu.memory_space<vmem>>, vector<3x512xf32>,
    %c1_i32 = arith.constant 1 : i32
    return
  }
  func.func @transform_0(%arg0: i32) -> (i32, i32) {
    %c0_i32 = arith.constant 0 : i32
    %c0_i32_0 = arith.constant 0 : i32
    return %c0_i32, %arg0 : i32, i32
  }
  func.func @transform_1(%arg0: i32) -> (i32, i32) {
    %c0_i32 = arith.constant 0 : i32
    %c0_i32_0 = arith.constant 0 : i32
    %c0_i32_1 = arith.constant 0 : i32
    return %c0_i32, %c0_i32_0 : i32, i32
  }
  func.func @transform_2(%arg0: i32) -> (i32, i32) {
    %c0_i32 = arith.constant 0 : i32
    %c0_i32_0 = arith.constant 0 : i32
    %c0_i32_1 = arith.constant 0 : i32
    return %c0_i32, %c0_i32_0 : i32, i32
  }
  func.func @transform_3(%arg0: i32) -> (i32, i32) {
    %c0_i32 = arith.constant 0 : i32
    %c0_i32_0 = arith.constant 0 : i32
    %c0_i32_1 = arith.constant 0 : i32
    return %c0_i32, %c0_i32_0 : i32, i32
  }
  func.func @transform_4(%arg0: i32) -> (i32, i32) {
    %c0_i32 = arith.constant 0 : i32
    %c0_i32_0 = arith.constant 0 : i32
    %c0_i32_1 = arith.constant 0 : i32
    return %c0_i32, %c0_i32_0 : i32, i32
  }
  func.func @transform_5(%arg0: i32) -> (i32, i32) {
    %c0_i32 = arith.constant 0 : i32
    %c0_i32_0 = arith.constant 0 : i32
    %c0_i32_1 = arith.constant 0 : i32
    return %c0_i32, %c0_i32_0 : i32, i32
  }
  func.func @transform_6(%arg0: i32) -> (i32, i32) {
    %c0_i32 = arith.constant 0 : i32
    %c0_i32_0 = arith.constant 0 : i32
    %c0_i32_1 = arith.constant 0 : i32
    return %c0_i32, %c0_i32_0 : i32, i32
  }
  func.func @transform_7(%arg0: i32) -> (i32, i32) {
    %c0_i32 = arith.constant 0 : i32
    %c0_i32_0 = arith.constant 0 : i32
    %c0_i32_1 = arith.constant 0 : i32
    return %c0_i32, %c0_i32_0 : i32, i32
  }
  func.func @transform_8(%arg0: i32) -> (i32, i32) {
    %c0_i32 = arith.constant 0 : i32
    %c0_i32_0 = arith.constant 0 : i32
    return %c0_i32, %arg0 : i32, i32
  }
}

</mosaic_0001>

<bundles_post_ra>
// kernel: tpu_custom_call.1
= control target key start
LH: loop header
LB: loop body
LE: loop exit
PB: predicated region body
PF: predicated region fallthrough
CT: control target
= control target key end

     0   :  { %13 = vsyncpa [#allocation3], 0  ;;  %s4317_s0 = inlined_call_operand.vmem [shape: f32[3,2048], index: 0, kind: input, shape index: {}]   ;;  %s4318_s1 = inlined_call_operand.vmem [shape: f32[16,3], index: 1, kind: input, shape index: {}]   ;;  %s4319_s2 = inlined_call_operand.hbm [shape: f32[32,32], index: 2, kind: input, shape index: {}]   ;;  %s4320_s3 = inlined_call_operand.vmem [shape: f32[32,1], index: 3, kind: input, shape index: {}]   ;;  %s4321_s4 = inlined_call_operand.vmem [shape: f32[32,32], index: 4, kind: input, shape index: {}]   ;;  %s4322_s5 = inlined_call_operand.vmem [shape: f32[32,1], index: 5, kind: input, shape index: {}]   ;;  %s4323_s6 = inlined_call_operand.vmem [shape: f32[3,32], index: 6, kind: input, shape index: {}]   ;;  %s4324_s7 = inlined_call_operand.vmem [shape: f32[3,1], index: 7, kind: input, shape index: {}]   ;;  %s4325_s8 = inlined_call_operand.hbm [shape: f32[3,2048], index: 8, kind: output, shape index: {}]  }
   0x1   :  { %14 = vsyncpa [#allocation4], 0 }
   0x2   :  { %16 = vsyncpa [#allocation4 + $0x1], 0  ;;  %s3279_s27 = smov 0   ;;  %s3281_s28 = smov 0  }
   0x3   :  { %s3283_s29 = smov 0   ;;  %s3285_s30 = smov 0  }
   0x4 LB: > { %s3300_s9 = sadd.s32 4294967295, %s3220_s30   ;;  %s2889_s10 = sadd.s32 4294967294, %s3220_s30   ;;  %s3220_s30 = sphi %s3285_s30, %s4370_s30   ;;  %s3216_s29 = sphi %s3283_s29, %s4369_s29   ;;  %s3212_s28 = sphi %s3281_s28, %s4368_s28   ;;  %s3208_s27 = sphi %s3279_s27, %s4367_s27  }
   0x5   : > { %s3304_s11 = sadd.s32 1, %s3220_s30   ;;  %s202_s12 = sadd.s32 1, %s3216_s29 }
   0x6   : > { %s199_s13 = ssub.s32 %s3220_s30, %s3304_s11  ;;  %p212_p0 = scmp.ne.s32.totalorder %s3216_s29, %s3212_s28 }
   0x7   : > { %p200_p1 = scmp.eq.s32.totalorder %s199_s13, 0  ;;  %p213_p2 = scmp.eq.s32.totalorder %s3300_s9, 3 }
   0x8   : > { %p218_p3 = scmp.ne.s32.totalorder %s3212_s28, %s3208_s27  ;;  %p219_p4 = scmp.eq.s32.totalorder %s2889_s10, 3 }
   0x9   : > { %s3315_s14 = scalar_select %p200_p1, %s3216_s29, %s202_s12  }
   0xa   : > { %p3317_p5 = por %p213_p2, %p212_p0  ;;  %p3321_p6 = por %p219_p4, %p218_p3 }
   0xb   : > { %p2890_p7 = scmp.ge.s32.totalorder %s3220_s30, 1  ;;  %p226_p8 = scmp.lt.s32.totalorder %s3220_s30, 5 }
   0xc   : > { %s4338_s16 = scalar_select %p3321_p6, 1, 0 }
   0xd   : > { %p3040_p9 = scmp.eq.s32.totalorder %s3300_s9, 0  ;;  %p3328_p10 = pnand %p2890_p7, %p226_p8 }
   0xe   : > { %s3222_s18 = smov [#allocation2]  }
   0xf   : > { %s241_s19 = sshll.u32 %s3222_s18, 4  ;;  %p3032_p11 = pneg %p3328_p10  ;;  %s242_s19 = int_to_ptr.vmem [resolvable:$true] %s241_s19 }
  0x10   : > { %s3141_s20 = scalar_lea.vmem %s242_s19, 512  ;;  %p3149_p3 = scmp.lt.s32.totalorder %s242_s19, %s242_s19 }
  0x11   : > { %p3033_p12 = pnand %p3040_p9, %p3032_p11  ;;  %p3142_p0 = scmp.ne.s32.totalorder %s242_s19, %s3141_s20 }
  0x12   : > { %p3150_p4 = scmp.lt.s32.totalorder %s3141_s20, %s3141_s20 }
  0x13   : > { %p3132_p13 = pneg %p3033_p12 }
  0x14   : > { %p3151_p6 = por %p3150_p4, %p3149_p3 }
  0x15   : > { %p3144_p1 = pnand %p3142_p0, %p3132_p13 }
  0x17   : > { %p3145_p2 = pneg %p3144_p1 }
  0x19   : > { %p3152_p7 = pnand %p3151_p6, %p3145_p2 }
  0x1b   : > { %3155 = shalt.err (!%p3152_p7)
}
  0x1c   : > { %s3223_s21 = smov 128   ;;  %s3224_s22 = smov 8  }
  0x1d   : > { %3035 = dma.hbm_to_vmem [thread:$0]  (!%p3033_p12), %s4319_s2, 512, %s242_s19, [#allocation3], %s3223_s21, %s3223_s21, %s3224_s22  }
  0x1e   : > { %281 = sbr.rel (%p3328_p10) target bundleno = 1134 (0x46e), region = 52 }
  0x23   : > { %3199 = dma.done.wait (%p3040_p9), [#allocation3], 512  }
  0x24   : > { %3201 = vsyncadd (%p3040_p9), [#allocation3], 4294966784  ;;  %s2896_s25 = sshll.u32 %s3300_s9, 2  ;;  %v4326_v0 = vmov 0.0   ;;  %vm337_vm0 = vcmask 1042432   ;;  %v324_v5 = vld [vmem:[%s4318_s1] sm:$0xff] }
  0x25   : > { %p316_p8 = scmp.lt.s32.totalorder %s2896_s25, 15  ;;  %410 = vmatprep.mubr.f32.mxu0 %v4326_v0  ;;  %487 = vmatprep.mubr.f32.mxu1 %v4326_v0  ;;  %vm330_vm1 = vcmask 23552   ;;  %v325_v6 = vld [vmem:[%s4318_s1 + $0x8] sm:$0xff]  ;;  %v3226_v36 = vmov 683565275   ;;  %s312_s23 = sand.u32 1, %s3212_s28  }
  0x26   : > { %v3227_v38 = vmov 2475754826   ;;  %v3228_v40 = vmov 2131351028   ;;  %v4335_v42 = vmov 2102212464  }
  0x27   : > { %s4372_s25 = smov (!%p316_p8, %s2896_s25), 15  ;;  %v3230_v47 = vmov 920167782   ;;  %v3231_v50 = vmov 1326507024   ;;  %s2895_s24 = sshll.u32 %s312_s23, 4 }
  0x28   : > { %s2897_s26 = sshll.u32 %s4372_s25, 2  ;;  %s314_s25 = scalar_lea.vmem [#allocation5], %s2895_s24 }
  0x29   : > { %s319_s13 = scalar_lea.vmem %s4317_s0, %s2897_s26  ;;  %s2993_s26 = sshll.u32 %s3300_s9, 8 }
  0x2a   : > { %v322_v1 = vld [vmem:[%s319_s13] sm:$0x77]  ;;  %v323_v2 = vld [vmem:[%s319_s13 + $0x8] sm:$0x77]  ;;  %s2818_s10 = sshll.u32 %s314_s25, 4  ;;  %s2816_s17 = scalar_lea.hbm %s4325_s8, %s2993_s26  ;;  %s2819_s10 = int_to_ptr.vmem [resolvable:$true] %s2818_s10 }
  0x2b   : > { %v328_v3 = vcombine.high %v322_v1, %v322_v1  ;;  %v329_v4 = vcombine.high %v323_v2, %v323_v2  ;;  %s2804_s18 = scalar_lea.sflag [#allocation4], %s312_s23  ;;  %s3156_s19 = scalar_lea.vmem %s2819_s10, 256 }
  0x2c   : > { %p3157_p6 = scmp.ne.s32.totalorder %s2819_s10, %s3156_s19  ;;  %s3233_s20 = smov [#allocation5]  }
  0x2d   : > { %2898 = vmatprep.subr.msk.mxu0 %vm337_vm0, %v328_v3  ;;  %2902 = vmatprep.subr.msk.mxu1 %vm337_vm0, %v329_v4  ;;  %s3160_s21 = sshll.u32 %s3233_s20, 4  ;;  %s3161_s21 = int_to_ptr.vmem [resolvable:$false] %s3160_s21 }
  0x2e   : > { %2899 = vmatpush1.msk.msra.mxu0 %vm337_vm0, %v322_v1  ;;  %2903 = vmatpush1.msk.msra.mxu1 %vm337_vm0, %v323_v2  ;;  %p3158_p9 = pnand %p3157_p6, %p3317_p5  ;;  %s3162_s9 = scalar_lea.vmem %s3161_s21, 512 }
  0x2f   : > { %2900 = vmatmul.mubr.msk.f32.vlgmr.msra.gmra.mxu0 %vm330_vm1, %v324_v5  ;;  %2904 = vmatmul.mubr.msk.f32.vlgmr.msra.gmra.mxu1 %vm330_vm1, %v324_v5  ;;  %p3163_p11 = scmp.lt.s32.totalorder %s2819_s10, %s3161_s21  ;;  %p3164_p12 = scmp.lt.s32.totalorder %s3162_s9, %s3156_s19 }
  0x30   : > { %416 = vmatprep.mubr.f32.mxu0 %v4326_v0  ;;  %493 = vmatprep.mubr.f32.mxu1 %v4326_v0  ;;  %p3159_p10 = pneg %p3158_p9 }
  0x31   : > { %p3165_p13 = por %p3164_p12, %p3163_p11 }
  0x33   : > { %2901 = vmatmul.mubr.msk.f32.gmra.mxu0 %vm330_vm1, %v325_v6  ;;  %2905 = vmatmul.mubr.msk.f32.gmra.mxu1 %vm330_vm1, %v325_v6  ;;  %p3166_p0 = pnand %p3165_p13, %p3159_p10 }
  0x34   : > { %2261 = vmatprep.mubr.f32.mxu0 %v4326_v0  ;;  %2350 = vmatprep.mubr.f32.mxu1 %v4326_v0 }
  0xef   : > { %v3361_v7 = vpop.f32.mrf.mxu0  ;;  %v3363_v8 = vpop.f32.mrf.mxu1 }
  0xf0   : > { %v4331_v9 = vand.u32 2147483647, %v3361_v7  ;;  %v503_v10 = vand.u32 2139095040, %v3361_v7  ;;  %v711_v11 = vand.u32 2139095040, %v3363_v8  ;;  %v4330_v22 = vand.u32 2147483647, %v3363_v8 }
  0xf1   : > { %v3368_v12 = vpop.f32.mrf.mxu0 }
  0xf2   : > { %v504_v13 = vshrl.u32 %v503_v10, 23  ;;  %v507_v14 = vand.u32 8388607, %v4331_v9  ;;  %v712_v15 = vshrl.u32 %v711_v11, 23  ;;  %v607_v16 = vand.u32 2139095040, %v3368_v12 }
  0xf3   : > { %v3378_v30 = vand.u32 8388607, %v4330_v22  ;;  %v4333_v31 = vand.u32 2147483647, %v3368_v12 }
  0xf4   : > { %v2906_v17 = vadd.s32 4294967169, %v504_v13  ;;  %v2914_v18 = vadd.s32 4294967169, %v712_v15  ;;  %v608_v19 = vshrl.u32 %v607_v16, 23  ;;  %v508_v21 = vor.u32 8388608, %v507_v14 }
  0xf6   : > { %v510_v20 = vadd.s32 1, %v2906_v17  ;;  %v718_v23 = vadd.s32 1, %v2914_v18  ;;  %v2910_v24 = vadd.s32 4294967169, %v608_v19  ;;  %v3374_v29 = vshll.u32 %v508_v21, 8 }
  0xf8   : > { %vm511_vm2 = vcmp.gt.s32.totalorder %v510_v20, 0  ;;  %vm719_vm3 = vcmp.gt.s32.totalorder %v718_v23, 0  ;;  %v3383_v35 = vadd.s32 1, %v2910_v24 }
  0xf9   : > { %v512_v25 = vsel %vm511_vm2, %v510_v20, 0  ;;  %v720_v27 = vsel %vm719_vm3, %v718_v23, 0 }
  0xfa   : > { %v514_v26 = vand.u32 31, %v512_v25  ;;  %v513_v28 = vshrl.u32 %v512_v25, 5  ;;  %v3381_v33 = vshrl.u32 %v720_v27, 5  ;;  %v722_v34 = vand.u32 31, %v720_v27 }
  0xfb   : > { %vm615_vm8 = vcmp.gt.s32.totalorder %v3383_v35, 0 }
  0xfc   : > { %v515_v32 = vsub.s32 32, %v514_v26  ;;  %v517_v37 = vshll.u32 %v3226_v36, %v514_v26  ;;  %v520_v39 = vshll.u32 %v3227_v38, %v514_v26  ;;  %v523_v41 = vshll.u32 %v3228_v40, %v514_v26 }
  0xfd   : > { %v526_v43 = vshll.u32 %v4335_v42, %v514_v26  ;;  %v529_v48 = vshll.u32 %v3230_v47, %v514_v26  ;;  %vm532_vm4 = vcmp.lt.s32.totalorder %v513_v28, 1  ;;  %vm533_vm5 = vcmp.lt.s32.totalorder %v513_v28, 2 }
  0xfe   : > { %v518_v44 = vshrl.u32 %v3227_v38, %v515_v32  ;;  %v521_v45 = vshrl.u32 %v3228_v40, %v515_v32  ;;  %v524_v46 = vshrl.u32 %v4335_v42, %v515_v32  ;;  %v527_v49 = vshrl.u32 %v3230_v47, %v515_v32 }
  0xff   : > { %v530_v51 = vshrl.u32 %v3231_v50, %v515_v32  ;;  %v3395_v55 = vsub.s32 32, %v722_v34  ;;  %v516_v56 = vshrl.u32 %v3226_v36, %v515_v32  ;;  %vm535_vm6 = vcmp.lt.s32.totalorder %v513_v28, 4 }
 0x100   : > { %v519_v52 = vor.u32 %v518_v44, %v517_v37  ;;  %v522_v53 = vor.u32 %v521_v45, %v520_v39  ;;  %v525_v54 = vor.u32 %v524_v46, %v523_v41  ;;  %v528_v57 = vor.u32 %v527_v49, %v526_v43 }
 0x101   : > { %v531_v58 = vor.u32 %v530_v51, %v529_v48  ;;  %vm534_vm7 = vcmp.lt.s32.totalorder %v513_v28, 3  ;;  %v725_v1 = vshll.u32 %v3226_v36, %v722_v34  ;;  %v728_v2 = vshll.u32 %v3227_v38, %v722_v34 }
 0x102   : > { %v537_v59 = vsel %vm535_vm6, %v525_v54, 2102212464  ;;  %v540_v60 = vsel %vm532_vm4, %v519_v52, %v522_v53  ;;  %v544_v61 = vsel %vm532_vm4, %v522_v53, %v525_v54  ;;  %v541_v62 = vsel %vm535_vm6, %v528_v57, 920167782 }
 0x103   : > { %v545_v63 = vsel %vm535_vm6, %v531_v58, 1326507024  ;;  %v536_v3 = vsel %vm532_vm4, %v516_v56, %v519_v52  ;;  %v542_v4 = vsel %vm534_vm7, %v525_v54, %v541_v62  ;;  %v726_v6 = vshrl.u32 %v3227_v38, %v3395_v55  ;;  %v3456_v54 = vpop.f32.mrf.mxu1 }
 0x104   : > { %v546_v5 = vsel %vm534_vm7, %v528_v57, %v545_v63  ;;  %v538_v10 = vsel %vm534_vm7, %v522_v53, %v537_v59  ;;  %v543_v11 = vsel %vm533_vm5, %v540_v60, %v542_v4  ;;  %v729_v14 = vshrl.u32 %v3228_v40, %v3395_v55 }
 0x105   : > { %v547_v13 = vsel %vm533_vm5, %v544_v61, %v546_v5  ;;  %v3414_v17 = vmul.u32.u64.low %v3374_v29, %v543_v11  ;;  %v3415_v18 = vmul.u32.u64.high %v3374_v29, %v543_v11, %v3414_v17  ;;  %v727_v19 = vor.u32 %v726_v6, %v725_v1 }
 0x106   : > { %v3410_v15 = vmul.u32.u64.low %v3374_v29, %v547_v13  ;;  %v3411_v16 = vmul.u32.u64.high %v3374_v29, %v547_v13, %v3410_v15  ;;  %v730_v20 = vor.u32 %v729_v14, %v728_v2  ;;  %v731_v21 = vshll.u32 %v3228_v40, %v722_v34 }
 0x107   : > { %v732_v23 = vshrl.u32 %v4335_v42, %v3395_v55  ;;  %v539_v24 = vsel %vm533_vm5, %v536_v3, %v538_v10  ;;  %v734_v25 = vshll.u32 %v4335_v42, %v722_v34  ;;  %v735_v26 = vshrl.u32 %v3230_v47, %v3395_v55 }
 0x108   : > { %v738_v27 = vshrl.u32 %v3231_v50, %v3395_v55  ;;  %v716_v32 = vor.u32 8388608, %v3378_v30  ;;  %v737_v39 = vshll.u32 %v3230_v47, %v722_v34  ;;  %vm557_vm9 = vc.u32 %v3411_v16, %v3414_v17 }
 0x109   : > { %v733_v37 = vor.u32 %v732_v23, %v731_v21  ;;  %v558_v28 = vadd.s32 1, %v3415_v18  ;;  %v736_v41 = vor.u32 %v735_v26, %v734_v25  ;;  %vm740_vm10 = vcmp.lt.s32.totalorder %v3381_v33, 1 }
 0x10a   : > { %v555_v43 = vmul.u32 %v3374_v29, %v539_v24  ;;  %v739_v44 = vor.u32 %v738_v27, %v737_v39  ;;  %vm743_vm11 = vcmp.lt.s32.totalorder %v3381_v33, 4  ;;  %v748_v30 = vsel %vm740_vm10, %v727_v19, %v730_v20 }
 0x10b   : > { %v559_v34 = vsel %vm557_vm9, %v558_v28, %v3415_v18  ;;  %vm742_vm12 = vcmp.lt.s32.totalorder %v3381_v33, 3  ;;  %v749_v45 = vsel %vm743_vm11, %v736_v41, 920167782  ;;  %v752_v46 = vsel %vm740_vm10, %v730_v20, %v733_v37 }
 0x10c   : > { %v560_v48 = vadd.s32 %v559_v34, %v555_v43  ;;  %vm741_vm13 = vcmp.lt.s32.totalorder %v3381_v33, 2  ;;  %v750_v29 = vsel %vm742_vm12, %v733_v37, %v749_v45  ;;  %v753_v49 = vsel %vm743_vm11, %v739_v44, 1326507024 }
 0x10d   : > { %v751_v51 = vsel %vm741_vm13, %v748_v30, %v750_v29  ;;  %v754_v52 = vsel %vm742_vm12, %v736_v41, %v753_v49  ;;  %v616_v53 = vsel %vm615_vm8, %v3383_v35, 0  ;;  %v756_v58 = vshll.u32 %v716_v32, 8 }
 0x10e   : > { %v561_v56 = vadd.s32 536870912, %v560_v48  ;;  %v755_v57 = vsel %vm741_vm13, %v752_v46, %v754_v52  ;;  %v611_v59 = vand.u32 8388607, %v4333_v31  ;;  %v618_v62 = vand.u32 31, %v616_v53 }
 0x10f   : > { %v3462_v60 = vmul.u32.u64.low %v756_v58, %v751_v51  ;;  %v3463_v61 = vmul.u32.u64.high %v756_v58, %v751_v51, %v3462_v60  ;;  %v815_v63 = vand.u32 2139095040, %v3456_v54  ;;  %v745_v35 = vsel %vm743_vm11, %v733_v37, 2102212464 }
 0x110   : > { %v3469_v1 = vmul.u32.u64.low %v756_v58, %v755_v57  ;;  %v3470_v2 = vmul.u32.u64.high %v756_v58, %v755_v57, %v3469_v1  ;;  %v3472_v3 = vshrl.u32 %v561_v56, 30  ;;  %v724_v4 = vshrl.u32 %v3226_v36, %v3395_v55 }
 0x111   : > { %v619_v5 = vsub.s32 32, %v618_v62  ;;  %v746_v10 = vsel %vm742_vm12, %v730_v20, %v745_v35  ;;  %v612_v11 = vor.u32 8388608, %v611_v59  ;;  %v816_v13 = vshrl.u32 %v815_v63, 23 }
 0x112   : > { %v744_v6 = vsel %vm740_vm10, %v724_v4, %v727_v19  ;;  %v621_v14 = vshll.u32 %v3226_v36, %v618_v62  ;;  %v624_v18 = vshll.u32 %v3227_v38, %v618_v62  ;;  %v563_v23 = vshll.u32 %v3472_v3, 30 }
 0x113   : > { %v622_v15 = vshrl.u32 %v3227_v38, %v619_v5  ;;  %v625_v21 = vshrl.u32 %v3228_v40, %v619_v5  ;;  %v617_v55 = vshrl.u32 %v616_v53, 5  ;;  %v627_v24 = vshll.u32 %v3228_v40, %v618_v62 }
 0x114   : > { %v628_v19 = vshrl.u32 %v4335_v42, %v619_v5  ;;  %v630_v20 = vshll.u32 %v4335_v42, %v618_v62  ;;  %v631_v27 = vshrl.u32 %v3230_v47, %v619_v5  ;;  %v766_v32 = vadd.s32 1, %v3463_v61 }
 0x115   : > { %v623_v25 = vor.u32 %v622_v15, %v621_v14  ;;  %v626_v26 = vor.u32 %v625_v21, %v624_v18  ;;  %v633_v39 = vshll.u32 %v3230_v47, %v618_v62  ;;  %v634_v28 = vshrl.u32 %v3231_v50, %v619_v5 }
 0x116   : > { %v629_v37 = vor.u32 %v628_v19, %v627_v24  ;;  %v747_v41 = vsel %vm741_vm13, %v744_v6, %v746_v10  ;;  %vm765_vm14 = vc.u32 %v3470_v2, %v3462_v60  ;;  %v632_v43 = vor.u32 %v631_v27, %v630_v20 }
 0x117   : > { %v652_v44 = vshll.u32 %v612_v11, 8  ;;  %v635_v30 = vor.u32 %v634_v28, %v633_v39  ;;  %vm636_vm15 = vcmp.lt.s32.totalorder %v617_v55, 1  ;;  %vm639_vm0 = vcmp.lt.s32.totalorder %v617_v55, 4 }
 0x118   : > { %v2918_v34 = vadd.s32 4294967169, %v816_v13  ;;  %vm638_vm1 = vcmp.lt.s32.totalorder %v617_v55, 3  ;;  %v644_v45 = vsel %vm636_vm15, %v623_v25, %v626_v26  ;;  %v645_v46 = vsel %vm639_vm0, %v632_v43, 920167782 }
 0x119   : > { %v648_v29 = vsel %vm636_vm15, %v626_v26, %v629_v37  ;;  %v3498_v49 = vsub.s32 %v560_v48, %v563_v23  ;;  %v767_v33 = vsel %vm765_vm14, %v766_v32, %v3463_v61  ;;  %v646_v51 = vsel %vm638_vm1, %v629_v37, %v645_v46 }
 0x11a   : > { %v649_v52 = vsel %vm639_vm0, %v635_v30, 1326507024  ;;  %v763_v53 = vmul.u32 %v756_v58, %v747_v41  ;;  %vm637_vm2 = vcmp.lt.s32.totalorder %v617_v55, 2  ;;  %v641_v56 = vsel %vm639_vm0, %v629_v37, 2102212464 }
 0x11b   : > { %v650_v57 = vsel %vm638_vm1, %v632_v43, %v649_v52  ;;  %v620_v59 = vshrl.u32 %v3226_v36, %v619_v5  ;;  %v647_v62 = vsel %vm637_vm2, %v644_v45, %v646_v51  ;;  %v566_v48 = vsub.s32 0, %v3498_v49 }
 0x11c   : > { %v651_v63 = vsel %vm637_vm2, %v648_v29, %v650_v57  ;;  %v768_v35 = vadd.s32 %v767_v33, %v763_v53  ;;  %v642_v6 = vsel %vm638_vm1, %v626_v26, %v641_v56  ;;  %v822_v10 = vadd.s32 1, %v2918_v34 }
 0x11d   : > { %v3504_v1 = vmul.u32.u64.low %v652_v44, %v651_v63  ;;  %v3505_v4 = vmul.u32.u64.high %v652_v44, %v651_v63, %v3504_v1  ;;  %v640_v61 = vsel %vm636_vm15, %v620_v59, %v623_v25  ;;  %v4329_v5 = vand.u32 2147483647, %v3456_v54 }
 0x11e   : > { %v3510_v58 = vmul.u32.u64.low %v652_v44, %v647_v62  ;;  %v3511_v11 = vmul.u32.u64.high %v652_v44, %v647_v62, %v3510_v58  ;;  %vm823_vm3 = vcmp.gt.s32.totalorder %v822_v10, 0  ;;  %v643_v13 = vsel %vm637_vm2, %v640_v61, %v642_v6  ;;  %v3538_v1 = vpop.f32.mrf.mxu0 }
 0x11f   : > { %v824_v14 = vsel %vm823_vm3, %v822_v10, 0  ;;  %v2907_v15 = vmin.u32 %v566_v48, %v3498_v49  ;;  %v769_v18 = vadd.s32 536870912, %v768_v35  ;;  %v659_v55 = vmul.u32 %v652_v44, %v643_v13 }
 0x120   : > { %vm661_vm4 = vc.u32 %v3505_v4, %v3510_v58  ;;  %v826_v21 = vand.u32 31, %v824_v14  ;;  %v662_v23 = vadd.s32 1, %v3511_v11  ;;  %v819_v19 = vand.u32 8388607, %v4329_v5 }
 0x121   : > { %v568_v26 = vclz %v2907_v15  ;;  %v3522_v20 = vshrl.u32 %v769_v18, 30  ;;  %v825_v51 = vshrl.u32 %v824_v14, 5  ;;  %v919_v14 = vand.u32 2139095040, %v3538_v1 }
 0x122   : > { %v663_v24 = vsel %vm661_vm4, %v662_v23, %v3511_v11  ;;  %v827_v25 = vsub.s32 32, %v826_v21  ;;  %v820_v37 = vor.u32 8388608, %v819_v19  ;;  %v829_v34 = vshll.u32 %v3226_v36, %v826_v21 }
 0x123   : > { %v664_v27 = vadd.s32 %v663_v24, %v659_v55  ;;  %v2908_v41 = vadd.s32 4294967294, %v568_v26  ;;  %v771_v43 = vshll.u32 %v3522_v20, 30  ;;  %v832_v45 = vshll.u32 %v3227_v38, %v826_v21 }
 0x124   : > { %v830_v39 = vshrl.u32 %v3227_v38, %v827_v25  ;;  %v833_v28 = vshrl.u32 %v3228_v40, %v827_v25  ;;  %v836_v30 = vshrl.u32 %v4335_v42, %v827_v25  ;;  %v838_v46 = vshll.u32 %v4335_v42, %v826_v21 }
 0x125   : > { %v665_v32 = vadd.s32 536870912, %v664_v27  ;;  %v839_v29 = vshrl.u32 %v3230_v47, %v827_v25  ;;  %v835_v52 = vshll.u32 %v3228_v40, %v826_v21  ;;  %v842_v53 = vshrl.u32 %v3231_v50, %v827_v25 }
 0x126   : > { %v831_v56 = vor.u32 %v830_v39, %v829_v34  ;;  %v834_v57 = vor.u32 %v833_v28, %v832_v45  ;;  %v841_v62 = vshll.u32 %v3230_v47, %v826_v21  ;;  %vm2909_vm5 = vcmp.lt.s32.totalorder %v2908_v41, 0 }
 0x127   : > { %v3527_v44 = vshrl.u32 %v665_v32, 30  ;;  %v840_v59 = vor.u32 %v839_v29, %v838_v46  ;;  %v837_v63 = vor.u32 %v836_v30, %v835_v52  ;;  %v3540_v48 = vsub.s32 %v768_v35, %v771_v43 }
 0x128   : > { %v843_v61 = vor.u32 %v842_v53, %v841_v62  ;;  %vm844_vm6 = vcmp.lt.s32.totalorder %v825_v51, 1  ;;  %vm847_vm7 = vcmp.lt.s32.totalorder %v825_v51, 4  ;;  %v860_v10 = vshll.u32 %v820_v37, 8 }
 0x129   : > { %v667_v33 = vshll.u32 %v3527_v44, 30  ;;  %vm846_vm8 = vcmp.lt.s32.totalorder %v825_v51, 3  ;;  %v852_v11 = vsel %vm844_vm6, %v831_v56, %v834_v57  ;;  %v853_v13 = vsel %vm847_vm7, %v840_v59, 920167782 }
 0x12a   : > { %vm845_vm9 = vcmp.lt.s32.totalorder %v825_v51, 2  ;;  %v849_v15 = vsel %vm847_vm7, %v837_v63, 2102212464  ;;  %v854_v18 = vsel %vm846_vm8, %v837_v63, %v853_v13  ;;  %v856_v21 = vsel %vm844_vm6, %v834_v57, %v837_v63  ;;  %v3575_v13 = vpop.f32.mrf.mxu1 }
 0x12b   : > { %v3542_v6 = vsub.s32 %v664_v27, %v667_v33  ;;  %v774_v35 = vsub.s32 0, %v3540_v48  ;;  %v828_v23 = vshrl.u32 %v3226_v36, %v827_v25  ;;  %v855_v55 = vsel %vm845_vm9, %v852_v11, %v854_v18 }
 0x12c   : > { %v857_v24 = vsel %vm847_vm7, %v843_v61, 1326507024  ;;  %v3553_v27 = vmul.u32.u64.low %v860_v10, %v855_v55  ;;  %v3554_v32 = vmul.u32.u64.high %v860_v10, %v855_v55, %v3553_v27  ;;  %v850_v39 = vsel %vm846_vm8, %v834_v57, %v849_v15 }
 0x12d   : > { %v670_v19 = vsub.s32 0, %v3542_v6  ;;  %v858_v26 = vsel %vm846_vm8, %v840_v59, %v857_v24  ;;  %v848_v37 = vsel %vm844_vm6, %v828_v23, %v831_v56  ;;  %v920_v43 = vshrl.u32 %v919_v14, 23 }
 0x12e   : > { %v859_v28 = vsel %vm845_vm9, %v856_v21, %v858_v26  ;;  %v3564_v34 = vsel %vm2909_vm5, 0, %v2908_v41  ;;  %v2915_v45 = vmin.u32 %v774_v35, %v3540_v48  ;;  %v851_v33 = vsel %vm845_vm9, %v848_v37, %v850_v39 }
 0x12f   : > { %v3560_v30 = vmul.u32.u64.low %v860_v10, %v859_v28  ;;  %v3561_v25 = vmul.u32.u64.high %v860_v10, %v859_v28, %v3560_v30  ;;  %v2922_v46 = vadd.s32 4294967169, %v920_v43  ;;  %v2911_v29 = vmin.u32 %v670_v19, %v3542_v6 }
 0x130   : > { %v870_v52 = vadd.s32 1, %v3554_v32  ;;  %v576_v56 = vsub.s32 4294967266, %v3564_v34  ;;  %v776_v57 = vclz %v2915_v45  ;;  %v867_v59 = vmul.u32 %v860_v10, %v851_v33 }
 0x131   : > { %v926_v53 = vadd.s32 1, %v2922_v46  ;;  %vm869_vm10 = vc.u32 %v3561_v25, %v3553_v27  ;;  %v672_v41 = vclz %v2911_v29  ;;  %v4332_v63 = vand.u32 2147483647, %v3538_v1 }
 0x132   : > { %v871_v62 = vsel %vm869_vm10, %v870_v52, %v3554_v32  ;;  %v556_v14 = vadd.s32 %v3414_v17, %v3411_v16  ;;  %v572_v15 = vsub.s32 32, %v3564_v34  ;;  %v573_v10 = vshll.u32 %v3498_v49, %v3564_v34 }
 0x133   : > { %vm927_vm11 = vcmp.gt.s32.totalorder %v926_v53, 0  ;;  %v872_v11 = vadd.s32 %v871_v62, %v867_v59  ;;  %v586_v18 = vsub.s32 4, %v3472_v3  ;;  %v3583_v21 = vadd.s32 127, %v576_v56 }
 0x134   : > { %v928_v61 = vsel %vm927_vm11, %v926_v53, 0  ;;  %v3585_v35 = vadd.s32 4294967294, %v776_v57  ;;  %v2912_v24 = vadd.s32 4294967294, %v672_v41  ;;  %v923_v19 = vand.u32 8388607, %v4332_v63 }
 0x135   : > { %v930_v51 = vand.u32 31, %v928_v61  ;;  %v873_v23 = vadd.s32 536870912, %v872_v11  ;;  %v1127_v16 = vand.u32 2139095040, %v3575_v13  ;;  %v929_v39 = vshrl.u32 %v928_v61, 5 }
 0x136   : > { %vm2913_vm12 = vcmp.lt.s32.totalorder %v2912_v24, 0  ;;  %vm502_vm13 = vcmp.lt.s32.totalorder %v3361_v7, 0  ;;  %v574_v56 = vshrl.u32 %v556_v14, %v572_v15  ;;  %v578_v57 = vshll.u32 %v3583_v21, 23 }
 0x137   : > { %v931_v55 = vsub.s32 32, %v930_v51  ;;  %v933_v26 = vshll.u32 %v3226_v36, %v930_v51  ;;  %v3591_v17 = vshrl.u32 %v873_v23, 30  ;;  %v936_v32 = vshll.u32 %v3227_v38, %v930_v51 }
 0x138   : > { %v942_v43 = vshll.u32 %v4335_v42, %v930_v51  ;;  %v939_v29 = vshll.u32 %v3228_v40, %v930_v51  ;;  %v945_v52 = vshll.u32 %v3230_v47, %v930_v51  ;;  %vm2917_vm14 = vcmp.lt.s32.totalorder %v3585_v35, 0 }
 0x139   : > { %v934_v49 = vshrl.u32 %v3227_v38, %v931_v55  ;;  %v937_v37 = vshrl.u32 %v3228_v40, %v931_v55  ;;  %v940_v28 = vshrl.u32 %v4335_v42, %v931_v55  ;;  %v943_v30 = vshrl.u32 %v3230_v47, %v931_v55 }
 0x13a   : > { %v875_v34 = vshll.u32 %v3591_v17, 30  ;;  %v946_v53 = vshrl.u32 %v3231_v50, %v931_v55  ;;  %v924_v62 = vor.u32 8388608, %v923_v19  ;;  %vm948_vm15 = vcmp.lt.s32.totalorder %v929_v39, 1 }
 0x13b   : > { %v935_v45 = vor.u32 %v934_v49, %v933_v26  ;;  %v938_v46 = vor.u32 %v937_v37, %v936_v32  ;;  %v944_v33 = vor.u32 %v943_v30, %v942_v43  ;;  %v941_v41 = vor.u32 %v940_v28, %v939_v29 }
 0x13c   : > { %v3605_v59 = vsub.s32 %v872_v11, %v875_v34  ;;  %v947_v61 = vor.u32 %v946_v53, %v945_v52  ;;  %v3608_v23 = vsel %vm2913_vm12, 0, %v2912_v24  ;;  %vm951_vm0 = vcmp.lt.s32.totalorder %v929_v39, 4 }
 0x13d   : > { %v956_v51 = vsel %vm948_vm15, %v935_v45, %v938_v46  ;;  %v1128_v26 = vshrl.u32 %v1127_v16, 23  ;;  %v932_v49 = vshrl.u32 %v3226_v36, %v931_v55  ;;  %vm949_vm1 = vcmp.lt.s32.totalorder %v929_v39, 2 }
 0x13e   : > { %vm950_vm2 = vcmp.lt.s32.totalorder %v929_v39, 3  ;;  %v957_v14 = vsel %vm951_vm0, %v944_v33, 920167782  ;;  %v878_v11 = vsub.s32 0, %v3605_v59  ;;  %v953_v15 = vsel %vm951_vm0, %v941_v41, 2102212464 }
 0x13f   : > { %v958_v21 = vsel %vm950_vm2, %v941_v41, %v957_v14  ;;  %v960_v32 = vsel %vm948_vm15, %v938_v46, %v941_v41  ;;  %v961_v37 = vsel %vm951_vm0, %v947_v61, 1326507024  ;;  %v964_v24 = vshll.u32 %v924_v62, 8 }
 0x140   : > { %v959_v19 = vsel %vm949_vm1, %v956_v51, %v958_v21  ;;  %v4328_v28 = vand.u32 2147483647, %v3575_v13  ;;  %v680_v43 = vsub.s32 4294967266, %v3608_v23  ;;  %v952_v16 = vsel %vm948_vm15, %v932_v49, %v935_v45 }
 0x141   : > { %v962_v55 = vsel %vm950_vm2, %v944_v33, %v961_v37  ;;  %v2930_v30 = vadd.s32 4294967169, %v1128_v26  ;;  %v954_v34 = vsel %vm950_vm2, %v938_v46, %v953_v15  ;;  %v2919_v41 = vmin.u32 %v878_v11, %v3605_v59  ;;  %v3638_v33 = vpop.f32.mrf.mxu0 }
 0x142   : > { %v963_v29 = vsel %vm949_vm1, %v960_v32, %v962_v55  ;;  %v3619_v52 = vmul.u32.u64.low %v964_v24, %v959_v19  ;;  %v3620_v53 = vmul.u32.u64.high %v964_v24, %v959_v19, %v3619_v52  ;;  %v3627_v14 = vor.u32 %v574_v56, %v573_v10 }
 0x143   : > { %v3624_v51 = vmul.u32.u64.low %v964_v24, %v963_v29  ;;  %v3625_v61 = vmul.u32.u64.high %v964_v24, %v963_v29, %v3624_v51  ;;  %v1134_v62 = vadd.s32 1, %v2930_v30  ;;  %v3632_v45 = vsel %vm502_vm13, %v586_v18, %v3472_v3 }
 0x144   : > { %v3636_v46 = vadd.s32 %v3462_v60, %v3470_v2  ;;  %v3640_v26 = vor.u32 4788187, %v578_v57  ;;  %v955_v11 = vsel %vm949_vm1, %v952_v16, %v954_v34  ;;  %v3647_v10 = vsel %vm2917_vm14, 0, %v3585_v35 }
 0x145   : > { %vm1135_vm3 = vcmp.gt.s32.totalorder %v1134_v62, 0  ;;  %v660_v3 = vadd.s32 %v3510_v58, %v3505_v4  ;;  %v974_v60 = vadd.s32 1, %v3620_v53  ;;  %v681_v18 = vadd.s32 127, %v680_v43 }
 0x146   : > { %v1136_v2 = vsel %vm1135_vm3, %v1134_v62, 0  ;;  %v880_v56 = vclz %v2919_v41  ;;  %v1131_v57 = vand.u32 8388607, %v4328_v28  ;;  %v1023_v39 = vand.u32 2139095040, %v3638_v33 }
 0x147   : > { %v582_v15 = vcvt.s32.f32 %v3627_v14  ;;  %v971_v21 = vmul.u32 %v964_v24, %v955_v11  ;;  %vm973_vm4 = vc.u32 %v3625_v61, %v3619_v52  ;;  %v1138_v35 = vand.u32 31, %v1136_v2 }
 0x148   : > { %v580_v32 = vand.u32 2147483647, %v3640_v26  ;;  %v780_v4 = vsub.s32 32, %v3647_v10  ;;  %v975_v19 = vsel %vm973_vm4, %v974_v60, %v3620_v53  ;;  %v784_v37 = vsub.s32 4294967266, %v3647_v10 }
 0x149   : > { %v676_v43 = vsub.s32 32, %v3608_v23  ;;  %v976_v16 = vadd.s32 %v975_v19, %v971_v21  ;;  %v1139_v55 = vsub.s32 32, %v1138_v35  ;;  %v682_v24 = vshll.u32 %v681_v18, 23 }
 0x14a   : > { %v2920_v30 = vadd.s32 4294967294, %v880_v56  ;;  %v1132_v34 = vor.u32 8388608, %v1131_v57  ;;  %v1024_v29 = vshrl.u32 %v1023_v39, 23  ;;  %v1141_v51 = vshll.u32 %v3226_v36, %v1138_v35 }
 0x14b   : > { %v977_v41 = vadd.s32 536870912, %v976_v16  ;;  %v1142_v62 = vshrl.u32 %v3227_v38, %v1139_v55  ;;  %v1145_v26 = vshrl.u32 %v3228_v40, %v1139_v55  ;;  %v1144_v11 = vshll.u32 %v3227_v38, %v1138_v35 }
 0x14c   : > { %v1147_v53 = vshll.u32 %v3228_v40, %v1138_v35  ;;  %v1148_v60 = vshrl.u32 %v4335_v42, %v1139_v55  ;;  %v1151_v21 = vshrl.u32 %v3230_v47, %v1139_v55  ;;  %v1137_v18 = vshrl.u32 %v1136_v2, 5 }
 0x14d   : > { %v3672_v19 = vshrl.u32 %v977_v41, 30  ;;  %v1143_v56 = vor.u32 %v1142_v62, %v1141_v51  ;;  %v1150_v57 = vshll.u32 %v4335_v42, %v1138_v35  ;;  %v1146_v39 = vor.u32 %v1145_v26, %v1144_v11 }
 0x14e   : > { %v1149_v0 = vor.u32 %v1148_v60, %v1147_v53  ;;  %v1153_v28 = vshll.u32 %v3230_v47, %v1138_v35  ;;  %v1154_v49 = vshrl.u32 %v3231_v50, %v1139_v55  ;;  %v785_v5 = vadd.s32 127, %v784_v37 }
 0x14f   : > { %v677_v22 = vshll.u32 %v3542_v6, %v3608_v23  ;;  %v979_v9 = vshll.u32 %v3672_v19, 30  ;;  %v1152_v63 = vor.u32 %v1151_v21, %v1150_v57  ;;  %v678_v31 = vshrl.u32 %v660_v3, %v676_v43 }
 0x150   : > { %v683_v41 = vor.u32 4788187, %v682_v24  ;;  %v1155_v58 = vor.u32 %v1154_v49, %v1153_v28  ;;  %v1172_v2 = vshll.u32 %v1132_v34, 8  ;;  %vm2921_vm5 = vcmp.lt.s32.totalorder %v2920_v30, 0 }
 0x151   : > { %v3680_v51 = vsub.s32 %v976_v16, %v979_v9  ;;  %vm1156_vm6 = vcmp.lt.s32.totalorder %v1137_v18, 1  ;;  %vm1159_vm7 = vcmp.lt.s32.totalorder %v1137_v18, 4  ;;  %v1140_v35 = vshrl.u32 %v3226_v36, %v1139_v55 }
 0x152   : > { %v1161_v62 = vsel %vm1159_vm7, %v1149_v0, 2102212464  ;;  %v1164_v26 = vsel %vm1156_vm6, %v1143_v56, %v1146_v39  ;;  %v2926_v37 = vadd.s32 4294967169, %v1024_v29  ;;  %vm1158_vm8 = vcmp.lt.s32.totalorder %v1137_v18, 3 }
 0x153   : > { %v982_v11 = vsub.s32 0, %v3680_v51  ;;  %v1165_v6 = vsel %vm1159_vm7, %v1152_v63, 920167782  ;;  %v1168_v23 = vsel %vm1156_vm6, %v1146_v39, %v1149_v0  ;;  %vm1157_vm9 = vcmp.lt.s32.totalorder %v1137_v18, 2 }
 0x154   : > { %v1160_v3 = vsel %vm1156_vm6, %v1140_v35, %v1143_v56  ;;  %v1166_v43 = vsel %vm1158_vm8, %v1149_v0, %v1165_v6  ;;  %v1169_v28 = vsel %vm1159_vm7, %v1155_v58, 1326507024  ;;  %v1162_v9 = vsel %vm1158_vm8, %v1146_v39, %v1161_v62 }
 0x155   : > { %v2923_v49 = vmin.u32 %v982_v11, %v3680_v51  ;;  %v1167_v16 = vsel %vm1157_vm9, %v1164_v26, %v1166_v43  ;;  %v1170_v24 = vsel %vm1158_vm8, %v1152_v63, %v1169_v28  ;;  %v679_v34 = vor.u32 %v678_v31, %v677_v22 }
 0x156   : > { %v1171_v55 = vsel %vm1157_vm9, %v1168_v23, %v1170_v24  ;;  %v3687_v53 = vmul.u32.u64.low %v1172_v2, %v1167_v16  ;;  %v3688_v29 = vmul.u32.u64.high %v1172_v2, %v1167_v16, %v3687_v53  ;;  %v3692_v60 = vsel %vm2921_vm5, 0, %v2920_v30 }
 0x157   : > { %v984_v21 = vclz %v2923_v49  ;;  %v3694_v56 = vmul.u32.u64.low %v1172_v2, %v1171_v55  ;;  %v3695_v0 = vmul.u32.u64.high %v1172_v2, %v1171_v55, %v3694_v56  ;;  %v3699_v58 = vmul.f32 %v582_v15, %v580_v32 }
 0x158   : > { %v3702_v63 = vshrl.u32 %v3636_v46, %v780_v4  ;;  %v1163_v22 = vsel %vm1157_vm9, %v1160_v3, %v1162_v9  ;;  %v1030_v31 = vadd.s32 1, %v2926_v37  ;;  %v786_v57 = vshll.u32 %v785_v5, 23 }
 0x159   : > { %v684_v39 = vand.u32 2147483647, %v683_v41  ;;  %v2924_v35 = vadd.s32 4294967294, %v984_v21  ;;  %v4334_v30 = vand.u32 2147483647, %v3638_v33  ;;  %v686_v62 = vcvt.s32.f32 %v679_v34 }
 0x15a   : > { %v888_v26 = vsub.s32 4294967266, %v3692_v60  ;;  %v1182_v11 = vadd.s32 1, %v3688_v29  ;;  %vm1031_vm10 = vcmp.gt.s32.totalorder %v1030_v31, 0  ;;  %v1179_v14 = vmul.u32 %v1172_v2, %v1163_v22 }
 0x15b   : > { %vm2925_vm11 = vcmp.lt.s32.totalorder %v2924_v35, 0  ;;  %vm1181_vm12 = vc.u32 %v3695_v0, %v3687_v53  ;;  %v1032_v46 = vsel %vm1031_vm10, %v1030_v31, 0  ;;  %v3712_v18 = vor.u32 4788187, %v786_v57 }
 0x15c   : > { %v987_v32 = vsel %vm2925_vm11, 0, %v2924_v35  ;;  %v1183_v5 = vsel %vm1181_vm12, %v1182_v11, %v3688_v29  ;;  %v1034_v4 = vand.u32 31, %v1032_v46  ;;  %v3714_v41 = vmul.f32 %v686_v62, %v684_v39  ;;  %v3733_v35 = vpop.f32.mrf.mxu1 }
 0x15d   : > { %v992_v37 = vsub.s32 4294967266, %v987_v32  ;;  %v1184_v6 = vadd.s32 %v1183_v5, %v1179_v14  ;;  %v884_v23 = vsub.s32 32, %v3692_v60  ;;  %v988_v3 = vsub.s32 32, %v987_v32 }
 0x15e   : > { %v1027_v2 = vand.u32 8388607, %v4334_v30  ;;  %v1035_v43 = vsub.s32 32, %v1034_v4  ;;  %v3719_v28 = vadd.s32 127, %v888_v26  ;;  %v972_v49 = vadd.s32 %v3619_v52, %v3625_v61 }
 0x15f   : > { %v993_v9 = vadd.s32 127, %v992_v37  ;;  %v1185_v16 = vadd.s32 536870912, %v1184_v6  ;;  %v1037_v24 = vshll.u32 %v3226_v36, %v1034_v4  ;;  %v1040_v22 = vshll.u32 %v3227_v38, %v1034_v4 }
 0x160   : > { %v1038_v34 = vshrl.u32 %v3227_v38, %v1035_v43  ;;  %v1041_v55 = vshrl.u32 %v3228_v40, %v1035_v43  ;;  %v1044_v29 = vshrl.u32 %v4335_v42, %v1035_v43  ;;  %v1047_v31 = vshrl.u32 %v3230_v47, %v1035_v43 }
 0x161   : > { %v994_v21 = vshll.u32 %v993_v9, 23  ;;  %v3727_v56 = vshrl.u32 %v1185_v16, 30  ;;  %v990_v57 = vshrl.u32 %v972_v49, %v988_v3  ;;  %v1033_v39 = vshrl.u32 %v1032_v46, 5 }
 0x162   : > { %v1043_v52 = vshll.u32 %v3228_v40, %v1034_v4  ;;  %v1046_v61 = vshll.u32 %v4335_v42, %v1034_v4  ;;  %v989_v62 = vshll.u32 %v3680_v51, %v987_v32  ;;  %v1039_v11 = vor.u32 %v1038_v34, %v1037_v24 }
 0x163   : > { %v1187_v26 = vshll.u32 %v3727_v56, 30  ;;  %v1042_v14 = vor.u32 %v1041_v55, %v1040_v22  ;;  %v1049_v9 = vshll.u32 %v3230_v47, %v1034_v4  ;;  %v1050_v16 = vshrl.u32 %v3231_v50, %v1035_v43 }
 0x164   : > { %v1045_v5 = vor.u32 %v1044_v29, %v1043_v52  ;;  %v1048_v37 = vor.u32 %v1047_v31, %v1046_v61  ;;  %v995_v3 = vor.u32 4788187, %v994_v21  ;;  %v1028_v49 = vor.u32 8388608, %v1027_v2 }
 0x165   : > { %v3739_v46 = vsub.s32 %v1184_v6, %v1187_v26  ;;  %v1231_v30 = vand.u32 2139095040, %v3733_v35  ;;  %v991_v15 = vor.u32 %v990_v57, %v989_v62  ;;  %v1036_v42 = vshrl.u32 %v3226_v36, %v1035_v43 }
 0x166   : > { %v1051_v51 = vor.u32 %v1050_v16, %v1049_v9  ;;  %vm1052_vm14 = vcmp.lt.s32.totalorder %v1033_v39, 1  ;;  %vm1053_vm15 = vcmp.lt.s32.totalorder %v1033_v39, 2  ;;  %vm1055_vm0 = vcmp.lt.s32.totalorder %v1033_v39, 4 }
 0x167   : > { %v1190_v32 = vsub.s32 0, %v3739_v46  ;;  %v1060_v24 = vsel %vm1052_vm14, %v1039_v11, %v1042_v14  ;;  %vm1054_vm1 = vcmp.lt.s32.totalorder %v1033_v39, 3  ;;  %v1061_v4 = vsel %vm1055_vm0, %v1048_v37, 920167782 }
 0x168   : > { %v1064_v34 = vsel %vm1052_vm14, %v1042_v14, %v1045_v5  ;;  %v1065_v6 = vsel %vm1055_vm0, %v1051_v51, 1326507024  ;;  %v996_v55 = vand.u32 2147483647, %v995_v3  ;;  %v1057_v29 = vsel %vm1055_vm0, %v1045_v5, 2102212464 }
 0x169   : > { %v2931_v2 = vmin.u32 %v1190_v32, %v3739_v46  ;;  %v1062_v21 = vsel %vm1054_vm1, %v1045_v5, %v1061_v4  ;;  %v1066_v22 = vsel %vm1054_vm1, %v1048_v37, %v1065_v6  ;;  %v1068_v31 = vshll.u32 %v1028_v49, 8 }
 0x16a   : > { %v1063_v43 = vsel %vm1053_vm15, %v1060_v24, %v1062_v21  ;;  %v1232_v57 = vshrl.u32 %v1231_v30, 23  ;;  %vm606_vm2 = vcmp.lt.s32.totalorder %v3368_v12, 0  ;;  %v998_v52 = vcvt.s32.f32 %v991_v15 }
 0x16b   : > { %v1192_v61 = vclz %v2931_v2  ;;  %v1056_v62 = vsel %vm1052_vm14, %v1036_v42, %v1039_v11  ;;  %v1067_v26 = vsel %vm1053_vm15, %v1064_v34, %v1066_v22  ;;  %vm918_vm3 = vcmp.lt.s32.totalorder %v3538_v1, 0 }
 0x16c   : > { %v1058_v9 = vsel %vm1054_vm1, %v1042_v14, %v1057_v29  ;;  %v3755_v16 = vmul.u32.u64.low %v1068_v31, %v1067_v26  ;;  %v3756_v5 = vmul.u32.u64.high %v1068_v31, %v1067_v26, %v3755_v16  ;;  %v2934_v3 = vadd.s32 4294967169, %v1232_v57 }
 0x16d   : > { %v999_v51 = vmul.f32 %v998_v52, %v996_v55  ;;  %v2932_v37 = vadd.s32 4294967294, %v1192_v61  ;;  %v3758_v49 = vmul.u32.u64.low %v1068_v31, %v1063_v43  ;;  %v3759_v30 = vmul.u32.u64.high %v1068_v31, %v1063_v43, %v3758_v49 }
 0x16e   : > { %v4340_v15 = vshll.u32 %v3540_v48, %v3647_v10  ;;  %v868_v11 = vadd.s32 %v3553_v27, %v3561_v25  ;;  %v1228_v14 = vand.u32 2147483647, %v3733_v35  ;;  %v1238_v32 = vadd.s32 1, %v2934_v3 }
 0x16f   : > { %v788_v24 = vand.u32 2147483647, %v3712_v18  ;;  %v688_v4 = vxor.u32 2147483648, %v3714_v41  ;;  %vm2933_vm4 = vcmp.lt.s32.totalorder %v2932_v37, 0  ;;  %v1059_v34 = vsel %vm1053_vm15, %v1056_v62, %v1058_v9 }
 0x170   : > { %v783_v42 = vor.u32 %v3702_v63, %v4340_v15  ;;  %v886_v6 = vshrl.u32 %v868_v11, %v884_v23  ;;  %v1195_v55 = vsel %vm2933_vm4, 0, %v2932_v37  ;;  %vm1077_vm5 = vc.u32 %v3756_v5, %v3758_v49 }
 0x171   : > { %vm1239_vm6 = vcmp.gt.s32.totalorder %v1238_v32, 0  ;;  %v890_v48 = vshll.u32 %v3719_v28, 23  ;;  %v1000_v27 = vxor.u32 2147483648, %v999_v51  ;;  %v1200_v25 = vsub.s32 4294967266, %v1195_v55 }
 0x172   : > { %v1078_v10 = vadd.s32 1, %v3759_v30  ;;  %v790_v63 = vcvt.s32.f32 %v783_v42  ;;  %v1075_v18 = vmul.u32 %v1068_v31, %v1059_v34  ;;  %v1235_v39 = vand.u32 8388607, %v1228_v14 }
 0x173   : > { %v1240_v2 = vsel %vm1239_vm6, %v1238_v32, 0  ;;  %v885_v23 = vshll.u32 %v3605_v59, %v3692_v60  ;;  %v1196_v29 = vsub.s32 32, %v1195_v55  ;;  %v1201_v21 = vadd.s32 127, %v1200_v25 }
 0x174   : > { %v1079_v43 = vsel %vm1077_vm5, %v1078_v10, %v3759_v30  ;;  %v3783_v22 = vmul.f32 %v790_v63, %v788_v24  ;;  %v689_v28 = vsel %vm606_vm2, %v688_v4, %v3714_v41  ;;  %v1242_v52 = vand.u32 31, %v1240_v2 }
 0x175   : > { %v1080_v57 = vadd.s32 %v1079_v43, %v1075_v18  ;;  %v3788_v31 = vor.u32 %v886_v6, %v885_v23  ;;  %v3790_v61 = vor.u32 4788187, %v890_v48  ;;  %v1001_v62 = vsel %vm918_vm3, %v1000_v27, %v999_v51 }
 0x176   : > { %v1180_v59 = vadd.s32 %v3687_v53, %v3695_v0  ;;  %v1202_v60 = vshll.u32 %v1201_v21, 23  ;;  %v1236_v9 = vor.u32 8388608, %v1235_v39  ;;  %v1243_v16 = vsub.s32 32, %v1242_v52 }
 0x177   : > { %v1081_v26 = vadd.s32 536870912, %v1080_v57  ;;  %v1197_v3 = vshll.u32 %v3739_v46, %v1195_v55  ;;  %v1241_v41 = vshrl.u32 %v1240_v2, 5  ;;  %v1245_v30 = vshll.u32 %v3226_v36, %v1242_v52 }
 0x178   : > { %v1198_v37 = vshrl.u32 %v1180_v59, %v1196_v29  ;;  %v1246_v42 = vshrl.u32 %v3227_v38, %v1243_v16  ;;  %v1248_v11 = vshll.u32 %v3227_v38, %v1242_v52  ;;  %v1249_v51 = vshrl.u32 %v3228_v40, %v1243_v16 }
 0x179   : > { %v3798_v15 = vshrl.u32 %v1081_v26, 30  ;;  %v4341_v53 = vand.u32 2147483647, %v3368_v12  ;;  %v1251_v46 = vshll.u32 %v3228_v40, %v1242_v52  ;;  %v4344_v32 = vmov 2102212464  }
 0x17a   : > { %v1252_v24 = vshrl.u32 %v4344_v32, %v1243_v16  ;;  %v1254_v4 = vshll.u32 %v4344_v32, %v1242_v52  ;;  %v1255_v34 = vshrl.u32 %v3230_v47, %v1243_v16  ;;  %v4345_v6 = vand.u32 2147483647, %v3538_v1 }
 0x17b   : > { %vm3805_vm7 = vcmp.le.f32.partialorder %v4341_v53, 0.7853982  ;;  %v1203_v55 = vor.u32 4788187, %v1202_v60  ;;  %v1083_v48 = vshll.u32 %v3798_v15, 30  ;;  %v1247_v27 = vor.u32 %v1246_v42, %v1245_v30 }
 0x17c   : > { %vm3815_vm8 = vcmp.le.f32.partialorder %v4345_v6, 0.7853982  ;;  %v1250_v25 = vor.u32 %v1249_v51, %v1248_v11  ;;  %v1253_v10 = vor.u32 %v1252_v24, %v1251_v46  ;;  %v1256_v63 = vor.u32 %v1255_v34, %v1254_v4 }
 0x17d   : > { %v1257_v40 = vshll.u32 %v3230_v47, %v1242_v52  ;;  %v1258_v18 = vshrl.u32 %v3231_v50, %v1243_v16  ;;  %v1199_v39 = vor.u32 %v1198_v37, %v1197_v3  ;;  %v3822_v2 = vsub.s32 %v1080_v57, %v1083_v48 }
 0x17e   : > { %vm1260_vm9 = vcmp.lt.s32.totalorder %v1241_v41, 1  ;;  %v1276_v23 = vshll.u32 %v1236_v9, 8  ;;  %v1244_v29 = vshrl.u32 %v3226_v36, %v1243_v16  ;;  %vm1262_vm10 = vcmp.lt.s32.totalorder %v1241_v41, 3 }
 0x17f   : > { %v1259_v21 = vor.u32 %v1258_v18, %v1257_v40  ;;  %vm1263_vm11 = vcmp.lt.s32.totalorder %v1241_v41, 4  ;;  %v1086_v43 = vsub.s32 0, %v3822_v2  ;;  %v1268_v60 = vsel %vm1260_vm9, %v1247_v27, %v1250_v25 }
 0x180   : > { %v1265_v59 = vsel %vm1263_vm11, %v1253_v10, 2102212464  ;;  %v1269_v26 = vsel %vm1263_vm11, %v1256_v63, 920167782  ;;  %v1204_v30 = vand.u32 2147483647, %v1203_v55  ;;  %v1272_v50 = vsel %vm1260_vm9, %v1250_v25, %v1253_v10 }
 0x181   : > { %vm1261_vm12 = vcmp.lt.s32.totalorder %v1241_v41, 2  ;;  %v1270_v47 = vsel %vm1262_vm10, %v1253_v10, %v1269_v26  ;;  %v4348_v57 = vand.u32 2147483647, %v3361_v7  ;;  %v2927_v36 = vmin.u32 %v1086_v43, %v3822_v2 }
 0x182   : > { %v1264_v9 = vsel %vm1260_vm9, %v1244_v29, %v1247_v27  ;;  %v1271_v16 = vsel %vm1261_vm12, %v1268_v60, %v1270_v47  ;;  %v1273_v3 = vsel %vm1263_vm11, %v1259_v21, 1326507024  ;;  %v1266_v37 = vsel %vm1262_vm10, %v1250_v25, %v1265_v59 }
 0x183   : > { %vm3831_vm14 = vcmp.le.f32.partialorder %v4348_v57, 0.7853982  ;;  %v1274_v42 = vsel %vm1262_vm10, %v1256_v63, %v1273_v3  ;;  %v3840_v11 = vmul.u32.u64.low %v1276_v23, %v1271_v16  ;;  %v3841_v51 = vmul.u32.u64.high %v1276_v23, %v1271_v16, %v3840_v11 }
 0x184   : > { %vm710_vm15 = vcmp.lt.s32.totalorder %v3363_v8, 0  ;;  %v692_v53 = vsel %vm3805_vm7, %v3368_v12, %v689_v28  ;;  %v892_v46 = vand.u32 2147483647, %v3790_v61  ;;  %v1088_v32 = vclz %v2927_v36 }
 0x185   : > { %v1275_v24 = vsel %vm1261_vm12, %v1272_v50, %v1274_v42  ;;  %v1004_v4 = vsel %vm3815_vm8, %v3538_v1, %v1001_v62  ;;  %v1206_v34 = vcvt.s32.f32 %v1199_v39  ;;  %v4351_v48 = vxor.u32 2147483648, %v3699_v58 }
 0x186   : > { %v3853_v6 = vmul.u32.u64.low %v1276_v23, %v1275_v24  ;;  %v3854_v55 = vmul.u32.u64.high %v1276_v23, %v1275_v24, %v3853_v6  ;;  %v894_v28 = vcvt.s32.f32 %v3788_v31  ;;  %v2928_v61 = vadd.s32 4294967294, %v1088_v32 }
 0x187   : > { %v585_v27 = vsel %vm502_vm13, %v4351_v48, %v3699_v58  ;;  %v1267_v25 = vsel %vm1261_vm12, %v1264_v9, %v1266_v37  ;;  %v4352_v10 = vand.u32 2147483647, %v3363_v8  ;;  %v690_v62 = vsub.s32 4, %v3527_v44 }
 0x188   : > { %3090 = vcosq.f32 %v692_v53  ;;  %v1207_v40 = vmul.f32 %v1206_v34, %v1204_v30  ;;  %v1286_v18 = vadd.s32 1, %v3841_v51  ;;  %v792_v39 = vxor.u32 2147483648, %v3783_v22 }
 0x189   : > { %vm3865_vm0 = vcmp.le.f32.partialorder %v4352_v10, 0.7853982  ;;  %vm814_vm13 = vcmp.lt.s32.totalorder %v3456_v54, 0  ;;  %v895_v58 = vmul.f32 %v894_v28, %v892_v46  ;;  %3092 = vcosq.f32 %v1004_v4 }
 0x18a   : > { %vm2929_vm1 = vcmp.lt.s32.totalorder %v2928_v61, 0  ;;  %3094 = vsinq.f32 %v1004_v4  ;;  %v1283_v41 = vmul.u32 %v1276_v23, %v1267_v25  ;;  %vm1285_vm4 = vc.u32 %v3854_v55, %v3840_v11 }
 0x18b   : > { %v1091_v31 = vsel %vm2929_vm1, 0, %v2928_v61  ;;  %v1076_v29 = vadd.s32 %v3758_v49, %v3756_v5  ;;  %v1287_v59 = vsel %vm1285_vm4, %v1286_v18, %v3841_v51  ;;  %v588_v60 = vsel %vm3831_vm14, %v3361_v7, %v585_v27 }
 0x18c   : > { %v1092_v21 = vsub.s32 32, %v1091_v31  ;;  %v1096_v43 = vsub.s32 4294967266, %v1091_v31  ;;  %3096 = vsinq.f32 %v692_v53  ;;  %v4355_v26 = vand.u32 2147483647, %v3456_v54 }
 0x18d   : > { %v1208_v23 = vxor.u32 2147483648, %v1207_v40  ;;  %v1288_v47 = vadd.s32 %v1287_v59, %v1283_v41  ;;  %v1002_v50 = vsub.s32 4, %v3672_v19  ;;  %v1093_v5 = vshll.u32 %v3822_v2, %v1091_v31 }
 0x18e   : > { %vm3883_vm5 = vcmp.le.f32.partialorder %v4355_v26, 0.7853982  ;;  %v1094_v49 = vshrl.u32 %v1076_v29, %v1092_v21  ;;  %v1097_v57 = vadd.s32 127, %v1096_v43  ;;  %v3892_v36 = vsel %vm3831_vm14, 0, %v3632_v45 }
 0x18f   : > { %v793_v9 = vsel %vm710_vm15, %v792_v39, %v3783_v22  ;;  %v896_v16 = vxor.u32 2147483648, %v895_v58  ;;  %v1289_v3 = vadd.s32 536870912, %v1288_v47  ;;  %v4358_v37 = vsub.s32 4, %v3522_v20 }
 0x190   : > { %vm1126_vm6 = vcmp.lt.s32.totalorder %v3575_v13, 0  ;;  %v1095_v2 = vor.u32 %v1094_v49, %v1093_v5  ;;  %v1098_v51 = vshll.u32 %v1097_v57, 23  ;;  %3098 = vcosq.f32 %v588_v60 }
 0x191   : > { %v795_v42 = vsel %vm710_vm15, %v4358_v37, %v3522_v20  ;;  %v691_v45 = vsel %vm606_vm2, %v690_v62, %v3527_v44  ;;  %v1209_v22 = vsel %vm1126_vm6, %v1208_v23, %v1207_v40  ;;  %v3908_v52 = vshrl.u32 %v1289_v3, 30 }
 0x192   : > { %v796_v53 = vsel %vm3865_vm0, %v3363_v8, %v793_v9  ;;  %v1003_v20 = vsel %vm918_vm3, %v1002_v50, %v3672_v19  ;;  %v1210_v46 = vsub.s32 4, %v3727_v56  ;;  %v1099_v32 = vor.u32 4788187, %v1098_v51 }
 0x193   : > { %v897_v24 = vsel %vm814_vm13, %v896_v16, %v895_v58  ;;  %v4359_v44 = vand.u32 2147483647, %v3575_v13  ;;  %v1106_v34 = vsub.s32 4, %v3798_v15  ;;  %v1291_v6 = vshll.u32 %v3908_v52, 30 }
 0x194   : > { %3100 = vsinq.f32 %v588_v60  ;;  %v1100_v48 = vand.u32 2147483647, %v1099_v32  ;;  %v1102_v27 = vcvt.s32.f32 %v1095_v2  ;;  %v898_v28 = vsub.s32 4, %v3591_v17 }
 0x195   : > { %vm3921_vm2 = vcmp.le.f32.partialorder %v4359_v44, 0.7853982  ;;  %3102 = vcosq.f32 %v796_v53  ;;  %v1005_v61 = vsel %vm3815_vm8, 0, %v1003_v20  ;;  %v3933_v25 = vsub.s32 %v1288_v47, %v1291_v6  ;;  %v3935_v10 = vpop.eup %3090 }
 0x196   : > { %v1212_v19 = vsel %vm3921_vm2, %v3575_v13, %v1209_v22  ;;  %v900_v62 = vsel %vm3883_vm5, %v3456_v54, %v897_v24  ;;  %v1211_v40 = vsel %vm1126_vm6, %v1210_v46, %v3727_v56  ;;  %vm1022_vm3 = vcmp.lt.s32.totalorder %v3638_v33, 0  ;;  %v3944_v39 = vpop.eup %3092 }
 0x197   : > { %v1103_v18 = vmul.f32 %v1102_v27, %v1100_v48  ;;  %v3948_v38 = vsel %vm3865_vm0, 0, %v795_v42  ;;  %3104 = vcosq.f32 %v1212_v19  ;;  %v1107_v58 = vsel %vm1022_vm3, %v1106_v34, %v3798_v15  ;;  %v3954_v41 = vpop.eup %3094 }
 0x198   : > { %v1294_v31 = vsub.s32 0, %v3933_v25  ;;  %3106 = vsinq.f32 %v796_v53  ;;  %v4362_v56 = vand.u32 2147483647, %v3638_v33  ;;  %v1837_v21 = vand.u32 3, %v1005_v61 }
 0x199   : > { %v1104_v29 = vxor.u32 2147483648, %v1103_v18  ;;  %3108 = vcosq.f32 %v900_v62  ;;  %v3960_v63 = vsel %vm3921_vm2, 0, %v1211_v40  ;;  %v3965_v15 = vsel %vm3805_vm7, 0, %v691_v45  ;;  %v3967_v59 = vpop.eup %3096 }
 0x19a   : > { %vm1021_vm8 = vcmp.le.f32.partialorder %v4362_v56, 0.7853982  ;;  %v2935_v43 = vmin.u32 %v1294_v31, %v3933_v25  ;;  %v899_v60 = vsel %vm814_vm13, %v898_v28, %v3591_v17  ;;  %3110 = vsinq.f32 %v900_v62 }
 0x19b   : > { %v1105_v26 = vsel %vm1022_vm3, %v1104_v29, %v1103_v18  ;;  %v1109_v23 = vsel %vm1021_vm8, 0, %v1107_v58  ;;  %v1013_v5 = vxor.u32 2147483648, %v3954_v41  ;;  %v1016_v0 = vxor.u32 2147483648, %v3944_v39 }
 0x19c   : > { %v1108_v47 = vsel %vm1021_vm8, %v3638_v33, %v1105_v26  ;;  %v1296_v50 = vclz %v2935_v43  ;;  %vm1838_vm7 = vcmp.lt.s32.totalorder %v1837_v21, 2  ;;  %v3978_v49 = vand.u32 3, %v3960_v63 }
 0x19d   : > { %3112 = vcosq.f32 %v1108_v47  ;;  %v1528_v57 = vand.u32 3, %v3965_v15  ;;  %vm1008_vm9 = vweird.f32 %v3538_v1  ;;  %v701_v9 = vxor.u32 2147483648, %v3967_v59  ;;  %v3984_v3 = vpop.eup %3098 }
 0x19e   : > { %3114 = vsinq.f32 %v1108_v47  ;;  %v2936_v17 = vadd.s32 4294967294, %v1296_v50  ;;  %v704_v16 = vxor.u32 2147483648, %v3935_v10  ;;  %vm1230_vm10 = vcmp.lt.s32.totalorder %v3733_v35, 0 }
 0x19f   : > { %3116 = vsinq.f32 %v1212_v19  ;;  %v3987_v37 = vand.u32 3, %v1109_v23  ;;  %vm1839_vm11 = vcmp.eq.s32.totalorder %v1837_v21, 0  ;;  %vm1842_vm12 = vcmp.eq.s32.totalorder %v1837_v21, 2 }
 0x1a0   : > { %vm2937_vm14 = vcmp.lt.s32.totalorder %v2936_v17, 0  ;;  %v1841_v42 = vsel %vm1839_vm11, %v3944_v39, %v1013_v5  ;;  %v1844_v2 = vsel %vm1842_vm12, %v1016_v0, %v3954_v41  ;;  %vm696_vm15 = vweird.f32 %v3368_v12 }
 0x1a1   : > { %v1284_v51 = vadd.s32 %v3840_v11, %v3854_v55  ;;  %v1299_v45 = vsel %vm2937_vm14, 0, %v2936_v17  ;;  %vm1530_vm0 = vcmp.eq.s32.totalorder %v1528_v57, 0  ;;  %vm1533_vm13 = vcmp.eq.s32.totalorder %v1528_v57, 2  ;;  %v3998_v22 = vpop.eup %3100 }
 0x1a2   : > { %v1300_v53 = vsub.s32 32, %v1299_v45  ;;  %v1304_v20 = vsub.s32 4294967266, %v1299_v45  ;;  %v1532_v46 = vsel %vm1530_vm0, %v3935_v10, %v701_v9  ;;  %v1535_v32 = vsel %vm1533_vm13, %v704_v16, %v3967_v59  ;;  %v4006_v24 = vpop.eup %3102 }
 0x1a3   : > { %v1845_v44 = vsel %vm1838_vm7, %v1841_v42, %v1844_v2  ;;  %vm1529_vm1 = vcmp.lt.s32.totalorder %v1528_v57, 2  ;;  %v1113_v11 = vadd.s32 3, %v1109_v23  ;;  %v1009_v55 = vadd.s32 3, %v1005_v61 }
 0x1a4   : > { %v1301_v4 = vshll.u32 %v3933_v25, %v1299_v45  ;;  %v1302_v34 = vshrl.u32 %v1284_v51, %v1300_v53  ;;  %v1305_v6 = vadd.s32 127, %v1304_v20  ;;  %v1314_v19 = vsub.s32 4, %v3908_v52  ;;  %v4011_v48 = vpop.eup %3104 }
 0x1a5   : > { %vm1942_vm4 = vcmp.eq.s32.totalorder %v3987_v37, 0  ;;  %vm1945_vm6 = vcmp.eq.s32.totalorder %v3987_v37, 2  ;;  %v1536_v27 = vsel %vm1529_vm1, %v1532_v46, %v1535_v32  ;;  %v1425_v28 = vand.u32 3, %v3892_v36  ;;  %v4016_v62 = vpop.eup %3106 }
 0x1a6   : > { %v1303_v40 = vor.u32 %v1302_v34, %v1301_v4  ;;  %v1306_v18 = vshll.u32 %v1305_v6, 23  ;;  %vm1941_vm2 = vcmp.lt.s32.totalorder %v3987_v37, 2  ;;  %v597_v61 = vxor.u32 2147483648, %v3998_v22  ;;  %v4021_v58 = vpop.eup %3108 }
 0x1a7   : > { %v600_v25 = vxor.u32 2147483648, %v3984_v3  ;;  %vm1112_vm3 = vweird.f32 %v3638_v33  ;;  %v1846_v31 = vsel %vm1008_vm9, nan, %v1845_v44  ;;  %v4028_v56 = vsel %vm3883_vm5, 0, %v899_v60  ;;  %v4030_v43 = vpop.eup %3110 }
 0x1a8   : > { %v1114_v29 = vand.u32 3, %v1113_v11  ;;  %v1010_v21 = vand.u32 3, %v1009_v55  ;;  %vm4034_vm8 = vcmp.le.f32.partialorder %v1228_v14, 0.7853982  ;;  %v1307_v23 = vor.u32 4788187, %v1306_v18 }
 0x1a9   : > { %v1315_v47 = vsel %vm1230_vm10, %v1314_v19, %v3908_v52  ;;  %v1224_v50 = vxor.u32 2147483648, %v4011_v48  ;;  %v1537_v30 = vsel %vm696_vm15, nan, %v1536_v27  ;;  %vm1426_vm5 = vcmp.lt.s32.totalorder %v1425_v28, 2 }
 0x1aa   : > { %vm1427_vm7 = vcmp.eq.s32.totalorder %v1425_v28, 0  ;;  %vm1430_vm11 = vcmp.eq.s32.totalorder %v1425_v28, 2  ;;  %v697_v60 = vadd.s32 3, %v3965_v15  ;;  %v3113_v57 = vpop.eup %3112  ;;  %v1308_v14 = vand.u32 2147483647, %v1307_v23 }
 0x1ab   : > { %v1310_v17 = vcvt.s32.f32 %v1303_v40  ;;  %vm592_vm12 = vweird.f32 %v3361_v7  ;;  %v1429_v42 = vsel %vm1427_vm7, %v3984_v3, %v597_v61  ;;  %v1432_v52 = vsel %vm1430_vm11, %v600_v25, %v3998_v22  ;;  %v3115_v2 = vpop.eup %3114 }
 0x1ac   : > { %v1120_v51 = vxor.u32 2147483648, %v3113_v57  ;;  %vm1116_vm14 = vcmp.eq.s32.totalorder %v1114_v29, 0  ;;  %vm1119_vm0 = vcmp.eq.s32.totalorder %v1114_v29, 2  ;;  %vm1012_vm13 = vcmp.eq.s32.totalorder %v1010_v21, 0  ;;  %v4052_v45 = vpop.eup %3116 }
 0x1ad   : > { %v1311_v15 = vmul.f32 %v1310_v17, %v1308_v14  ;;  %v1117_v53 = vxor.u32 2147483648, %v3115_v2  ;;  %v1014_v20 = vsel %vm1012_vm13, %v3944_v39, %v1013_v5  ;;  %vm1015_vm1 = vcmp.eq.s32.totalorder %v1010_v21, 2 }
 0x1ae   : > { %v1947_v46 = vsel %vm1945_vm6, %v1120_v51, %v3115_v2  ;;  %v1017_v32 = vsel %vm1015_vm1, %v1016_v0, %v3954_v41  ;;  %v698_v44 = vand.u32 3, %v697_v60  ;;  %v593_v11 = vadd.s32 3, %v3892_v36 }
 0x1af   : > { %v1312_v55 = vxor.u32 2147483648, %v1311_v15  ;;  %v1944_v4 = vsel %vm1942_vm4, %v3113_v57, %v1117_v53  ;;  %vm2045_vm7 = vcmp.eq.s32.totalorder %v3978_v49, 0  ;;  %vm2048_vm11 = vcmp.eq.s32.totalorder %v3978_v49, 2 }
 0x1b0   : > { %v1118_v5 = vsel %vm1116_vm14, %v3113_v57, %v1117_v53  ;;  %v1121_v34 = vsel %vm1119_vm0, %v1120_v51, %v3115_v2  ;;  %v1948_v6 = vsel %vm1941_vm2, %v1944_v4, %v1947_v46  ;;  %v1433_v39 = vsel %vm1426_vm5, %v1429_v42, %v1432_v52  ;;  %v2161_v52 = vld [vmem:[%s4320_s3 + $0x8] sm:$0xff]  ;;  %v2162_v46 = vld [vmem:[%s4320_s3 + $0x10] sm:$0xff] }
 0x1b1   : > { %vm1115_vm6 = vcmp.lt.s32.totalorder %v1114_v29, 2  ;;  %vm1011_vm13 = vcmp.lt.s32.totalorder %v1010_v21, 2  ;;  %v1313_v36 = vsel %vm1230_vm10, %v1312_v55, %v1311_v15  ;;  %v1949_v41 = vsel %vm1112_vm3, nan, %v1948_v6  ;;  %v4144_v53 = vld [vmem:[#allocation2 + $0x8] sm:$0xff]  ;;  %v2160_v55 = vld [vmem:[%s4320_s3] sm:$0xff] }
 0x1b2   : > { %v1018_v0 = vsel %vm1011_vm13, %v1014_v20, %v1017_v32  ;;  %vm700_vm4 = vcmp.eq.s32.totalorder %v698_v44, 0  ;;  %v1316_v19 = vsel %vm4034_vm8, %v3733_v35, %v1313_v36  ;;  %2221 = vmatprep.subr.mxu0 %v1949_v41  ;;  %v1122_v27 = vsel %vm1115_vm6, %v1118_v5, %v1121_v34  ;;  %v4173_v34 = vld [vmem:[#allocation2 + $0x10] sm:$0xff] }
 0x1b3   : > { %v702_v37 = vsel %vm700_vm4, %v3935_v10, %v701_v9  ;;  %vm703_vm2 = vcmp.eq.s32.totalorder %v698_v44, 2  ;;  %3118 = vcosq.f32 %v1316_v19  ;;  %2222 = vmatpush1.msra.mxu0 %v1846_v31  ;;  %vm699_vm5 = vcmp.lt.s32.totalorder %v698_v44, 2 }
 0x1b4   : > { %v705_v28 = vsel %vm703_vm2, %v704_v16, %v3967_v59  ;;  %v594_v40 = vand.u32 3, %v593_v11  ;;  %3120 = vsinq.f32 %v1316_v19  ;;  %v1221_v18 = vxor.u32 2147483648, %v4052_v45  ;;  %2223 = vmatprep.subr.mxu0 %v1537_v30 }
 0x1b5   : > { %v1434_v29 = vsel %vm592_vm12, nan, %v1433_v39  ;;  %v706_v21 = vsel %vm699_vm5, %v702_v37, %v705_v28  ;;  %v909_v23 = vxor.u32 2147483648, %v4030_v43  ;;  %v912_v9 = vxor.u32 2147483648, %v4021_v58  ;;  %v2397_v37 = vld [vmem:[%s4322_s5 + $0x10] sm:$0xff] }
 0x1b6   : > { %v4091_v31 = vand.u32 3, %v4028_v56  ;;  %2224 = vmatpush1.msra.mxu0 %v1434_v29  ;;  %v1123_v10 = vsel %vm1112_vm3, nan, %v1122_v27  ;;  %v1317_v59 = vsel %vm4034_vm8, 0, %v1315_v47  ;;  %v1019_v16 = vsel %vm1008_vm9, nan, %v1018_v0  ;;  %v4118_v47 = vld [vmem:[#allocation2] sm:$0xff]  ;;  %v2398_v0 = vld [vmem:[%s4322_s5 + $0x18] sm:$0xff] }
 0x1b7   : > { %2225 = vmatprep.subr.mxu0 %v1123_v10  ;;  %vm596_vm10 = vcmp.eq.s32.totalorder %v594_v40, 0  ;;  %vm599_vm14 = vcmp.eq.s32.totalorder %v594_v40, 2  ;;  %v707_v30 = vsel %vm696_vm15, nan, %v706_v21  ;;  %vm595_vm0 = vcmp.lt.s32.totalorder %v594_v40, 2  ;;  %v2159_v10 = vld [vmem:[#allocation2 + $0x18] sm:$0xff] }
 0x1b8   : > { %2226 = vmatpush1.msra.mxu0 %v1019_v16  ;;  %v598_v60 = vsel %vm596_vm10, %v3984_v3, %v597_v61  ;;  %v601_v33 = vsel %vm599_vm14, %v600_v25, %v3998_v22  ;;  %v2047_v1 = vsel %vm2045_vm7, %v4011_v48, %v1221_v18  ;;  %v2050_v12 = vsel %vm2048_vm11, %v1224_v50, %v4052_v45  ;;  %v2163_v25 = vld [vmem:[%s4320_s3 + $0x18] sm:$0xff] }
 0x1b9   : > { %v1631_v26 = vand.u32 3, %v3948_v38  ;;  %2227 = vmatprep.subr.mxu0 %v707_v30  ;;  %v602_v61 = vsel %vm595_vm0, %v598_v60, %v601_v33  ;;  %v1321_v3 = vadd.s32 3, %v1317_v59  ;;  %vm2184_vm9 = vcmask 261120   ;;  %v2396_v30 = vld [vmem:[%s4322_s5 + $0x8] sm:$0xff] }
 0x1ba   : > { %v603_v22 = vsel %vm592_vm12, nan, %v602_v61  ;;  %v805_v57 = vxor.u32 2147483648, %v4016_v62  ;;  %v808_v14 = vxor.u32 2147483648, %v4006_v24  ;;  %v1217_v17 = vadd.s32 3, %v3960_v63 }
 0x1bb   : > { %2228 = vmatpush1.msra.mxu0 %v603_v22  ;;  %v3232_v42 = vmov 0   ;;  %v4131_v7 = vand.u32 3, %v1317_v59  ;;  %vm1216_vm15 = vweird.f32 %v3575_v13  ;;  %vm2044_vm3 = vcmp.lt.s32.totalorder %v3978_v49, 2 }
 0x1bc   : > { %3087 = vset.pattern.permute.xlu1 %v3232_v42  ;;  %vm1736_vm8 = vcmp.eq.s32.totalorder %v4091_v31, 0  ;;  %2970 = vmatmul.mubr.msk.f32.vlgmr.msra.gmra.mxu0 %vm2184_vm9, %v4118_v47  ;;  %v2051_v63 = vsel %vm2044_vm3, %v2047_v1, %v2050_v12  ;;  %vm1739_vm12 = vcmp.eq.s32.totalorder %v4091_v31, 2  ;;  %v905_v51 = vadd.s32 3, %v4028_v56 }
 0x1bd   : > { %3086 = vset.pattern.permute.xlu0 %v3232_v42  ;;  %v1738_v2 = vsel %vm1736_vm8, %v4021_v58, %v909_v23  ;;  %v4365_v15 = vmov 0.0   ;;  %vm1320_vm1 = vweird.f32 %v3733_v35  ;;  %v1741_v49 = vsel %vm1739_vm12, %v912_v9, %v4030_v43  ;;  %2171 = vperm.xlu1 %3087, %v2161_v52  }
 0x1be   : > { %2267 = vmatprep.mubr.f32.mxu0 %v4365_v15  ;;  %2181 = vperm.xlu0 %3086, %v2163_v25   ;;  %vm1633_vm7 = vcmp.eq.s32.totalorder %v1631_v26, 0  ;;  %vm1636_vm11 = vcmp.eq.s32.totalorder %v1631_v26, 2  ;;  %v1322_v20 = vand.u32 3, %v1321_v3  ;;  %v1218_v44 = vand.u32 3, %v1217_v17 }
 0x1bf   : > { %v1635_v56 = vsel %vm1633_vm7, %v4006_v24, %v805_v57  ;;  %v1638_v32 = vsel %vm1636_vm11, %v808_v14, %v4016_v62  ;;  %v801_v11 = vadd.s32 3, %v3948_v38  ;;  %vm2147_vm6 = vcmp.lt.s32.totalorder %v4131_v7, 2 }
 0x1c0   : > { %v2052_v4 = vsel %vm1216_vm15, nan, %v2051_v63  ;;  %vm904_vm13 = vweird.f32 %v3456_v54  ;;  %vm1735_vm4 = vcmp.lt.s32.totalorder %v4091_v31, 2  ;;  %2971 = vmatmul.mubr.msk.f32.gmra.mxu0 %vm2184_vm9, %v4144_v53  ;;  %v3119_v5 = vpop.eup %3118  ;;  %vm2148_vm2 = vcmp.eq.s32.totalorder %v4131_v7, 0 }
 0x1c1   : > { %vm2151_vm5 = vcmp.eq.s32.totalorder %v4131_v7, 2  ;;  %vm1632_vm10 = vcmp.lt.s32.totalorder %v1631_v26, 2  ;;  %v906_v38 = vand.u32 3, %v905_v51  ;;  %2273 = vmatprep.mubr.f32.mxu0 %v4365_v15  ;;  %v3121_v6 = vpop.eup %3120  ;;  %v1328_v39 = vxor.u32 2147483648, %v3119_v5  ;;  %2166 = vperm.xlu1 %3087, %v2160_v55  }
 0x1c2   : > { %2176 = vperm.xlu0 %3086, %v2162_v46   ;;  %v1742_v36 = vsel %vm1735_vm4, %v1738_v2, %v1741_v49  ;;  %v1639_v41 = vsel %vm1632_vm10, %v1635_v56, %v1638_v32  ;;  %vm1323_vm14 = vcmp.lt.s32.totalorder %v1322_v20, 2  ;;  %v1325_v19 = vxor.u32 2147483648, %v3121_v6 }
 0x1c3   : > { %vm1324_vm0 = vcmp.eq.s32.totalorder %v1322_v20, 0  ;;  %vm1220_vm3 = vcmp.eq.s32.totalorder %v1218_v44, 0  ;;  %v802_v27 = vand.u32 3, %v801_v11  ;;  %v2153_v28 = vsel %vm2151_vm5, %v1328_v39, %v3121_v6 }
 0x1c4   : > { %vm1327_vm8 = vcmp.eq.s32.totalorder %v1322_v20, 2  ;;  %v1222_v40 = vsel %vm1220_vm3, %v4011_v48, %v1221_v18  ;;  %vm1223_vm12 = vcmp.eq.s32.totalorder %v1218_v44, 2  ;;  %2972 = vmatmul.mubr.msk.f32.gmra.mxu0 %vm2184_vm9, %v4173_v34  ;;  %v2150_v29 = vsel %vm2148_vm2, %v3119_v5, %v1325_v19  ;;  %v2395_v48 = vld [vmem:[%s4322_s5] sm:$0xff] }
 0x1c5   : > { %v1326_v21 = vsel %vm1324_vm0, %v3119_v5, %v1325_v19  ;;  %v1329_v31 = vsel %vm1327_vm8, %v1328_v39, %v3121_v6  ;;  %vm908_vm7 = vcmp.eq.s32.totalorder %v906_v38, 0  ;;  %2279 = vmatprep.mubr.f32.mxu0 %v4365_v15  ;;  %v2154_v59 = vsel %vm2147_vm6, %v2150_v29, %v2153_v28  ;;  %2411 = vperm.xlu1 %3087, %v2397_v37   ;;  %v2392_v19 = vld [vmem:[%s4321_s4 + $0x8] sm:$0xff]  ;;  %v2393_v28 = vld [vmem:[%s4321_s4 + $0x10] sm:$0xff] }
 0x1c6   : > { %2416 = vperm.xlu0 %3086, %v2398_v0   ;;  %v1225_v18 = vsel %vm1223_vm12, %v1224_v50, %v4052_v45  ;;  %v910_v16 = vsel %vm908_vm7, %v4021_v58, %v909_v23  ;;  %vm911_vm11 = vcmp.eq.s32.totalorder %v906_v38, 2  ;;  %v2155_v60 = vsel %vm1320_vm1, nan, %v2154_v59  ;;  %v2394_v59 = vld [vmem:[%s4321_s4 + $0x18] sm:$0xff] }
 0x1c7   : > { %v913_v33 = vsel %vm911_vm11, %v912_v9, %v4030_v43  ;;  %vm804_vm6 = vcmp.eq.s32.totalorder %v802_v27, 0  ;;  %vm807_vm4 = vcmp.eq.s32.totalorder %v802_v27, 2  ;;  %2310 = vmatprep.subr.mxu1 %v2155_v60  ;;  %v1330_v50 = vsel %vm1323_vm14, %v1326_v21, %v1329_v31 }
 0x1c8   : > { %vm1219_vm2 = vcmp.lt.s32.totalorder %v1218_v44, 2  ;;  %v806_v45 = vsel %vm804_vm6, %v4006_v24, %v805_v57  ;;  %v809_v23 = vsel %vm807_vm4, %v808_v14, %v4016_v62  ;;  %2973 = vmatmul.mubr.msk.f32.gmra.mxu0 %vm2184_vm9, %v2159_v10  ;;  %2311 = vmatpush1.msra.mxu1 %v2052_v4  ;;  %v1743_v58 = vsel %vm904_vm13, nan, %v1742_v36  ;;  %v2626_v24 = vld [vmem:[%s4324_s7] sm:$0x7] }
 0x1c9   : > { %vm800_vm5 = vweird.f32 %v3363_v8  ;;  %v1226_v43 = vsel %vm1219_vm2, %v1222_v40, %v1225_v18  ;;  %vm907_vm10 = vcmp.lt.s32.totalorder %v906_v38, 2  ;;  %2312 = vmatprep.subr.mxu1 %v1743_v58  ;;  %vm803_vm14 = vcmp.lt.s32.totalorder %v802_v27, 2  ;;  %2401 = vperm.xlu1 %3087, %v2395_v48   ;;  %v2391_v36 = vld [vmem:[%s4321_s4] sm:$0xff] }
 0x1ca   : > { %2406 = vperm.xlu0 %3086, %v2396_v30   ;;  %v1640_v9 = vsel %vm800_vm5, nan, %v1639_v41  ;;  %v914_v1 = vsel %vm907_vm10, %v910_v16, %v913_v33  ;;  %v1331_v62 = vsel %vm1320_vm1, nan, %v1330_v50  ;;  %v810_v12 = vsel %vm803_vm14, %v806_v45, %v809_v23  ;;  %2495 = vmatprep.mubr.f32.mxu0 %v4365_v15 }
 0x1cb   : > { %2313 = vmatpush1.msra.mxu1 %v1640_v9  ;;  %v1227_v26 = vsel %vm1216_vm15, nan, %v1226_v43  ;;  %v915_v61 = vsel %vm904_vm13, nan, %v914_v1  ;;  %v811_v3 = vsel %vm800_vm5, nan, %v810_v12 }
 0x1cc   : > { %2314 = vmatprep.subr.mxu1 %v1331_v62 }
 0x1cd   : > { %2315 = vmatpush1.msra.mxu1 %v1227_v26 }
 0x1ce   : > { %2629 = vperm.xlu0 %3086, %v2626_v24   ;;  %2316 = vmatprep.subr.mxu1 %v915_v61 }
 0x1cf   : > { %2317 = vmatpush1.msra.mxu1 %v811_v3 }
 0x1d0   : > { %2974 = vmatmul.mubr.msk.f32.vlgmr.msra.gmra.mxu1 %vm2184_vm9, %v4118_v47 }
 0x1d1   : > { %2356 = vmatprep.mubr.f32.mxu1 %v4365_v15 }
 0x1d4   : > { %2975 = vmatmul.mubr.msk.f32.gmra.mxu1 %vm2184_vm9, %v4144_v53 }
 0x1d5   : > { %2362 = vmatprep.mubr.f32.mxu1 %v4365_v15 }
 0x1d8   : > { %2976 = vmatmul.mubr.msk.f32.gmra.mxu1 %vm2184_vm9, %v4173_v34 }
 0x1d9   : > { %2368 = vmatprep.mubr.f32.mxu1 %v4365_v15 }
 0x1dc   : > { %2977 = vmatmul.mubr.msk.f32.gmra.mxu1 %vm2184_vm9, %v2159_v10 }
 0x1dd   : > { %2584 = vmatprep.mubr.f32.mxu1 %v4365_v15 }
 0x238   : > { %v2172_v57 = vpop.permute.xlu1 %2171 }
 0x239   : > { %v2182_v47 = vpop.permute.xlu0 %2181 }
 0x23c   : > { %v2167_v51 = vpop.permute.xlu1 %2166 }
 0x23d   : > { %v2177_v17 = vpop.permute.xlu0 %2176 }
 0x241   : > { %v2417_v61 = vpop.permute.xlu0 %2416 }
 0x27c   : > { %v2263_v8 = vpop.f32.mrf.mxu0 }
 0x27d   : > { %v2264_v44 = vadd.f32 %v2263_v8, %v2167_v51  ;;  %v2412_v8 = vpop.permute.xlu1 %2411 }
 0x27e   : > { %v2265_v54 = vpop.f32.mrf.mxu0 }
 0x27f   : > { %v2266_v56 = vadd.f32 %v2265_v54, %v2167_v51  ;;  %v2375_v6 = vmax.f32 %v2264_v44, 0.0 }
 0x280   : > { %v2269_v13 = vpop.f32.mrf.mxu0 }
 0x281   : > { %v2270_v20 = vadd.f32 %v2269_v13, %v2172_v57  ;;  %v2376_v34 = vmax.f32 %v2266_v56, 0.0 }
 0x282   : > { %v2271_v35 = vpop.f32.mrf.mxu0 }
 0x283   : > { %v2272_v53 = vadd.f32 %v2271_v35, %v2172_v57  ;;  %v2379_v38 = vmax.f32 %v2270_v20, 0.0 }
 0x284   : > { %v2275_v22 = vpop.f32.mrf.mxu0 }
 0x285   : > { %v2276_v2 = vadd.f32 %v2275_v22, %v2177_v17  ;;  %v2380_v4 = vmax.f32 %v2272_v53, 0.0 }
 0x286   : > { %v2277_v25 = vpop.f32.mrf.mxu0 }
 0x287   : > { %v2278_v7 = vadd.f32 %v2277_v25, %v2177_v17  ;;  %v2383_v55 = vmax.f32 %v2276_v2, 0.0  ;;  %v2407_v25 = vpop.permute.xlu0 %2406 }
 0x288   : > { %v2281_v14 = vpop.f32.mrf.mxu0 }
 0x289   : > { %v2282_v42 = vadd.f32 %v2281_v14, %v2182_v47  ;;  %v2384_v32 = vmax.f32 %v2278_v7, 0.0 }
 0x28a   : > { %v2283_v52 = vpop.f32.mrf.mxu0 }
 0x28b   : > { %v2284_v63 = vadd.f32 %v2283_v52, %v2182_v47  ;;  %v2387_v46 = vmax.f32 %v2282_v42, 0.0  ;;  %v2402_v42 = vpop.permute.xlu1 %2401 }
 0x28d   : > { %v2388_v49 = vmax.f32 %v2284_v63, 0.0 }
 0x28f   : > { %2455 = vmatprep.subr.mxu0 %v2388_v49 }
 0x290   : > { %v2352_v11 = vpop.f32.mrf.mxu1  ;;  %2456 = vmatpush1.msra.mxu0 %v2387_v46 }
 0x291   : > { %2457 = vmatprep.subr.mxu0 %v2384_v32  ;;  %v2353_v50 = vadd.f32 %v2352_v11, %v2167_v51  ;;  %v2625_v11 = vld [vmem:[%s4323_s6] sm:$0x7] }
 0x292   : > { %v2354_v5 = vpop.f32.mrf.mxu1  ;;  %2458 = vmatpush1.msra.mxu0 %v2383_v55 }
 0x293   : > { %2459 = vmatprep.subr.mxu0 %v2380_v4  ;;  %v2355_v33 = vadd.f32 %v2354_v5, %v2167_v51  ;;  %v2377_v9 = vmax.f32 %v2353_v50, 0.0 }
 0x294   : > { %v2358_v39 = vpop.f32.mrf.mxu1  ;;  %2460 = vmatpush1.msra.mxu0 %v2379_v38 }
 0x295   : > { %2461 = vmatprep.subr.mxu0 %v2376_v34  ;;  %v2359_v30 = vadd.f32 %v2358_v39, %v2172_v57  ;;  %v2378_v43 = vmax.f32 %v2355_v33, 0.0 }
 0x296   : > { %v2360_v41 = vpop.f32.mrf.mxu1  ;;  %2462 = vmatpush1.msra.mxu0 %v2375_v6 }
 0x297   : > { %2978 = vmatmul.mubr.msk.f32.vlgmr.msra.gmra.mxu0 %vm2184_vm9, %v2391_v36  ;;  %v2361_v18 = vadd.f32 %v2360_v41, %v2172_v57  ;;  %v2381_v58 = vmax.f32 %v2359_v30, 0.0 }
 0x298   : > { %v2364_v0 = vpop.f32.mrf.mxu1  ;;  %2501 = vmatprep.mubr.f32.mxu0 %v4365_v15 }
 0x299   : > { %v2365_v10 = vadd.f32 %v2364_v0, %v2177_v17  ;;  %v2382_v23 = vmax.f32 %v2361_v18, 0.0 }
 0x29a   : > { %v2366_v27 = vpop.f32.mrf.mxu1 }
 0x29b   : > { %2979 = vmatmul.mubr.msk.f32.gmra.mxu0 %vm2184_vm9, %v2392_v19  ;;  %v2367_v21 = vadd.f32 %v2366_v27, %v2177_v17  ;;  %v2385_v45 = vmax.f32 %v2365_v10, 0.0 }
 0x29c   : > { %v2370_v37 = vpop.f32.mrf.mxu1  ;;  %2507 = vmatprep.mubr.f32.mxu0 %v4365_v15 }
 0x29d   : > { %v2371_v40 = vadd.f32 %v2370_v37, %v2182_v47  ;;  %v2386_v48 = vmax.f32 %v2367_v21, 0.0 }
 0x29e   : > { %v2372_v29 = vpop.f32.mrf.mxu1 }
 0x29f   : > { %v2373_v31 = vadd.f32 %v2372_v29, %v2182_v47  ;;  %2980 = vmatmul.mubr.msk.f32.gmra.mxu0 %vm2184_vm9, %v2393_v28  ;;  %v2389_v60 = vmax.f32 %v2371_v40, 0.0 }
 0x2a0   : > { %2513 = vmatprep.mubr.f32.mxu0 %v4365_v15 }
 0x2a1   : > { %v2390_v16 = vmax.f32 %v2373_v31, 0.0 }
 0x2a3   : > { %2544 = vmatprep.subr.mxu1 %v2390_v16  ;;  %2981 = vmatmul.mubr.msk.f32.gmra.mxu0 %vm2184_vm9, %v2394_v59  ;;  %v2630_v16 = vpop.permute.xlu0 %2629 }
 0x2a4   : > { %2545 = vmatpush1.msra.mxu1 %v2389_v60  ;;  %2699 = vmatprep.mubr.f32.mxu0 %v4365_v15 }
 0x2a5   : > { %2546 = vmatprep.subr.mxu1 %v2386_v48 }
 0x2a6   : > { %2547 = vmatpush1.msra.mxu1 %v2385_v45 }
 0x2a7   : > { %2548 = vmatprep.subr.mxu1 %v2382_v23 }
 0x2a8   : > { %2549 = vmatpush1.msra.mxu1 %v2381_v58 }
 0x2a9   : > { %2550 = vmatprep.subr.mxu1 %v2378_v43 }
 0x2aa   : > { %2551 = vmatpush1.msra.mxu1 %v2377_v9 }
 0x2ab   : > { %2982 = vmatmul.mubr.msk.f32.vlgmr.msra.gmra.mxu1 %vm2184_vm9, %v2391_v36 }
 0x2ac   : > { %2590 = vmatprep.mubr.f32.mxu1 %v4365_v15 }
 0x2af   : > { %2983 = vmatmul.mubr.msk.f32.gmra.mxu1 %vm2184_vm9, %v2392_v19 }
 0x2b0   : > { %2596 = vmatprep.mubr.f32.mxu1 %v4365_v15 }
 0x2b3   : > { %2984 = vmatmul.mubr.msk.f32.gmra.mxu1 %vm2184_vm9, %v2393_v28 }
 0x2b4   : > { %2602 = vmatprep.mubr.f32.mxu1 %v4365_v15 }
 0x2b7   : > { %2985 = vmatmul.mubr.msk.f32.gmra.mxu1 %vm2184_vm9, %v2394_v59 }
 0x2b8   : > { %2770 = vmatprep.mubr.f32.mxu1 %v4365_v15 }
 0x357   : > { %v2497_v1 = vpop.f32.mrf.mxu0 }
 0x358   : > { %v2498_v2 = vadd.f32 %v2497_v1, %v2402_v42 }
 0x359   : > { %v2499_v24 = vpop.f32.mrf.mxu0 }
 0x35a   : > { %v2500_v7 = vadd.f32 %v2499_v24, %v2402_v42  ;;  %v2609_v32 = vmax.f32 %v2498_v2, 0.0 }
 0x35b   : > { %v2503_v62 = vpop.f32.mrf.mxu0 }
 0x35c   : > { %v2504_v52 = vadd.f32 %v2503_v62, %v2407_v25  ;;  %v2610_v56 = vmax.f32 %v2500_v7, 0.0 }
 0x35d   : > { %v2505_v12 = vpop.f32.mrf.mxu0 }
 0x35e   : > { %v2506_v14 = vadd.f32 %v2505_v12, %v2407_v25  ;;  %v2613_v46 = vmax.f32 %v2504_v52, 0.0 }
 0x35f   : > { %v2509_v26 = vpop.f32.mrf.mxu0 }
 0x360   : > { %v2510_v57 = vadd.f32 %v2509_v26, %v2412_v8  ;;  %v2614_v49 = vmax.f32 %v2506_v14, 0.0 }
 0x361   : > { %v2511_v3 = vpop.f32.mrf.mxu0 }
 0x362   : > { %v2512_v47 = vadd.f32 %v2511_v3, %v2412_v8  ;;  %v2617_v53 = vmax.f32 %v2510_v57, 0.0 }
 0x363   : > { %v2515_v54 = vpop.f32.mrf.mxu0 }
 0x364   : > { %v2516_v13 = vadd.f32 %v2515_v54, %v2417_v61  ;;  %v2618_v63 = vmax.f32 %v2512_v47, 0.0 }
 0x365   : > { %v2517_v35 = vpop.f32.mrf.mxu0 }
 0x366   : > { %v2518_v22 = vadd.f32 %v2517_v35, %v2417_v61  ;;  %v2621_v15 = vmax.f32 %v2516_v13, 0.0 }
 0x368   : > { %v2622_v17 = vmax.f32 %v2518_v22, 0.0 }
 0x36a   : > { %2659 = vmatprep.subr.mxu0 %v2622_v17 }
 0x36b   : > { %v2586_v51 = vpop.f32.mrf.mxu1  ;;  %2660 = vmatpush1.msra.mxu0 %v2621_v15 }
 0x36c   : > { %2661 = vmatprep.subr.mxu0 %v2618_v63  ;;  %v2587_v29 = vadd.f32 %v2586_v51, %v2402_v42 }
 0x36d   : > { %v2588_v20 = vpop.f32.mrf.mxu1  ;;  %2662 = vmatpush1.msra.mxu0 %v2617_v53 }
 0x36e   : > { %2663 = vmatprep.subr.mxu0 %v2614_v49  ;;  %v2589_v28 = vadd.f32 %v2588_v20, %v2402_v42  ;;  %v2611_v18 = vmax.f32 %v2587_v29, 0.0 }
 0x36f   : > { %v2592_v44 = vpop.f32.mrf.mxu1  ;;  %2664 = vmatpush1.msra.mxu0 %v2613_v46 }
 0x370   : > { %2665 = vmatprep.subr.mxu0 %v2610_v56  ;;  %v2593_v27 = vadd.f32 %v2592_v44, %v2407_v25  ;;  %v2612_v59 = vmax.f32 %v2589_v28, 0.0 }
 0x371   : > { %v2594_v55 = vpop.f32.mrf.mxu1  ;;  %2666 = vmatpush1.msra.mxu0 %v2609_v32 }
 0x372   : > { %2986 = vmatmul.mubr.msk.f32.vlgmr.msra.gmra.mxu0 %vm2184_vm9, %v2625_v11  ;;  %v2595_v0 = vadd.f32 %v2594_v55, %v2407_v25  ;;  %v2615_v10 = vmax.f32 %v2593_v27, 0.0 }
 0x373   : > { %v2598_v4 = vpop.f32.mrf.mxu1 }
 0x374   : > { %v2599_v41 = vadd.f32 %v2598_v4, %v2412_v8  ;;  %v2616_v31 = vmax.f32 %v2595_v0, 0.0 }
 0x375   : > { %v2600_v5 = vpop.f32.mrf.mxu1 }
 0x376   : > { %v2601_v39 = vadd.f32 %v2600_v5, %v2412_v8  ;;  %v2619_v21 = vmax.f32 %v2599_v41, 0.0 }
 0x377   : > { %v2604_v38 = vpop.f32.mrf.mxu1 }
 0x378   : > { %v2605_v34 = vadd.f32 %v2604_v38, %v2417_v61  ;;  %v2620_v40 = vmax.f32 %v2601_v39, 0.0 }
 0x379   : > { %v2606_v6 = vpop.f32.mrf.mxu1 }
 0x37a   : > { %v2607_v36 = vadd.f32 %v2606_v6, %v2417_v61  ;;  %v2623_v37 = vmax.f32 %v2605_v34, 0.0 }
 0x37c   : > { %v2624_v19 = vmax.f32 %v2607_v36, 0.0 }
 0x37e   : > { %2730 = vmatprep.subr.mxu1 %v2624_v19 }
 0x37f   : > { %2731 = vmatpush1.msra.mxu1 %v2623_v37 }
 0x380   : > { %2732 = vmatprep.subr.mxu1 %v2620_v40 }
 0x381   : > { %2733 = vmatpush1.msra.mxu1 %v2619_v21 }
 0x382   : > { %2734 = vmatprep.subr.mxu1 %v2616_v31 }
 0x383   : > { %2735 = vmatpush1.msra.mxu1 %v2615_v10 }
 0x384   : > { %2736 = vmatprep.subr.mxu1 %v2612_v59 }
 0x385   : > { %2737 = vmatpush1.msra.mxu1 %v2611_v18 }
 0x386   : > { %2987 = vmatmul.mubr.msk.f32.vlgmr.msra.gmra.mxu1 %vm2184_vm9, %v2625_v11 }
 0x432   : > { %v2701_v30 = vpop.f32.mrf.mxu0 }
 0x433   : > { %v2702_v60 = vadd.f32 %v2701_v30, %v2630_v16 }
 0x434   : > { %v2703_v33 = vpop.f32.mrf.mxu0 }
 0x435   : > { %v2777_v48 = vmul.f32 0.5, %v2702_v60  ;;  %v2704_v50 = vadd.f32 %v2703_v33, %v2630_v16 }
 0x437   : > { %3122 = vtanh.f32 %v2777_v48  ;;  %v2778_v45 = vmul.f32 0.5, %v2704_v50 }
 0x439   : > { %3124 = vtanh.f32 %v2778_v45 }
 0x444   : > { %v3123_v23 = vpop.eup %3122 }
 0x445   : > { %v2785_v58 = vadd.f32 1.0, %v3123_v23 }
 0x446   : > { %v3125_v43 = vpop.eup %3124  ;;  %v2772_v9 = vpop.f32.mrf.mxu1 }
 0x447   : > { %v2773_v1 = vadd.f32 %v2772_v9, %v2630_v16  ;;  %v2786_v24 = vadd.f32 1.0, %v3125_v43  ;;  %v2789_v12 = vmul.f32 0.5, %v2785_v58 }
 0x448   : > { %v2774_v62 = vpop.f32.mrf.mxu1 }
 0x449   : > { %v2779_v26 = vmul.f32 0.5, %v2773_v1  ;;  %v2790_v61 = vmul.f32 0.5, %v2786_v24  ;;  %v2775_v3 = vadd.f32 %v2774_v62, %v2630_v16 }
 0x44b   : > { %3126 = vtanh.f32 %v2779_v26  ;;  %v2797_v8 = vcombine.low %v2789_v12, %v2790_v61  ;;  %v2780_v54 = vmul.f32 0.5, %v2775_v3 }
 0x44d   : > { %3128 = vtanh.f32 %v2780_v54  ;;  %2801 = vst [vmem:[%s314_s25] sm:$0x77] %v2797_v8 }
 0x458   : > { %v3127_v13 = vpop.eup %3126 }
 0x459   : > { %v2787_v35 = vadd.f32 1.0, %v3127_v13 }
 0x45a   : > { %v3129_v47 = vpop.eup %3128 }
 0x45b   : > { %v2788_v22 = vadd.f32 1.0, %v3129_v47  ;;  %v2791_v25 = vmul.f32 0.5, %v2787_v35 }
 0x45d   : > { %v2792_v57 = vmul.f32 0.5, %v2788_v22 }
 0x45f   : > { %v2798_v14 = vcombine.low %v2791_v25, %v2792_v57 }
 0x461   : > { %2802 = vst [vmem:[%s314_s25 + $0x8] sm:$0x77] %v2798_v14 }
 0x462   : > { %3169 = shalt.err (!%p3166_p0)
}
 0x463   : > { %s3170_s22 = scalar_lea.hbm %s2816_s17, 256  ;;  %s3174_s25 = scalar_lea.hbm %s4325_s8, 1024 }
 0x464   : > { %p3171_p1 = scmp.ne.s32.totalorder %s2816_s17, %s3170_s22  ;;  %p3175_p4 = scmp.lt.s32.totalorder %s2816_s17, %s4325_s8 }
 0x465   : > { %p3176_p7 = scmp.lt.s32.totalorder %s3174_s25, %s3170_s22 }
 0x466   : > { %p3172_p2 = pnand %p3171_p1, %p3317_p5 }
 0x467   : > { %p3177_p8 = por %p3176_p7, %p3175_p4 }
 0x468   : > { %p3173_p3 = pneg %p3172_p2 }
 0x46a   : > { %p3178_p6 = pnand %p3177_p8, %p3173_p3 }
 0x46c   : > { %3181 = shalt.err (!%p3178_p6)
}
 0x46d   : > { %3030 = dma.vmem_to_hbm [thread:$0]  (%p3317_p5), %s2819_s10, 256, %s2816_s17, %s2804_s18  }
 0x46e PF: > { %p3042_p9 = scmp.ge.s32.totalorder %s3220_s30, 2  ;;  %s2830_s13 = sand.u32 1, %s3208_s27  }
 0x46f   : > { %p4366_p10 = scmp.ne.s32.totalorder %s4338_s16, 0  ;;  %s2831_s19 = scalar_lea.sflag [#allocation4], %s2830_s13 }
 0x471   : > { %p3037_p11 = pnand %p3042_p9, %p4366_p10 }
 0x473   : > { %p3038_p12 = pneg %p3037_p11 }
 0x475   : > { %3203 = dma.done.wait (%p3038_p12), %s2831_s19, 256  }
 0x476   : > { %3205 = vsyncadd (%p3038_p12), %s2831_s19, 4294967040  ;;  %p19_p13 = scmp.ge.s32.totalorder %s3304_s11, 6   ;;  %s4367_s27 = smov %s3212_s28 }
 0x477   : > { %s4368_s28 = smov %s3216_s29  ;;  %s4369_s29 = smov %s3315_s14 }
 0x478   : > { %s4370_s30 = smov %s3304_s11  ;;  %21 = sbr.rel (!%p19_p13) target bundleno = 4 (0x4), region = 92 }
 0x47d   :  { %2836 = vsyncpa [#allocation3], 1 }
 0x47e   :  { %2838 = vsyncpa [#allocation3 + $0x1], 1 }
 0x47f   :  { %2839 = vsyncpa [#allocation4], 1 }
 0x480   :  { %2841 = vsyncpa [#allocation4 + $0x1], 1 }

</bundles_post_ra>
